<compile_context>
chip_gen: v7x
topology: tpu7x:2x2x1
jax: 0.10.0
libtpu: 0.0.40
codegen_flags: <defaults>
</compile_context>

<pallas_src>
import numpy as np
import jax
import jax.numpy as jnp
from jax.experimental import pallas as pl
from jax.experimental.pallas import tpu as pltpu

VMEM = pltpu.MemorySpace.VMEM

NUM_SEG = 12              # input "channels" (frames)
H, W = 8, 7               # spatial size (x: [batch, 12, 8, 7])
CH, CW = H - 2, W - 2     # 3x3 valid conv output: 6 x 5
IMG_FEAT = CH * CW        # 30
IMG_FEAT_P = 32           # padded -> per-group conv feature row = 4*32 = 128 lanes
NUM_FRAMES = 4            # frames per TRN group -> 3 groups of 4
NUM_GROUPS = 3
BOTTLENECK = 256          # TRN fc_fusion hidden dim
TRN_OUT = 64              # feature_bottleneck (TRN output)
FUSE = 64                 # fushion_2_feature_bottleneck_
PIX = H * W               # 56
ROW_IN = NUM_FRAMES * PIX             # 224
ROW_FEAT_P = NUM_FRAMES * IMG_FEAT_P  # 128 (lane-dense)

SCALES = (4, 3, 2)
RELATIONS = {
    4: [(0, 1, 2, 3)],
    3: [(0, 1, 2), (0, 1, 3), (0, 2, 3)],
    2: [(0, 1), (0, 2), (0, 3)],
}
NUM_REL = sum(len(RELATIONS[s]) for s in SCALES)   # 7
WIDE = NUM_REL * BOTTLENECK                        # 1792

# Column offsets inside bias_pack row 1 (all 128-aligned).
B_CONV_OFF = 0      # [0,128)    conv bias (per 32-wide frame block, pads zero)
B_F1_OFF = 128      # [128,256)  concat(fc1_0_b, fc1_1_b)
B_F2_OFF = 256      # [256,384)  concat(fc2_0_b, fc2_1_b)
B_TRN2_OFF = 384    # [384,448)  summed TRN second-linear bias
B_CLS_OFF = 512     # [512,512+C) classifier bias

# Static im2col scatter pattern: one-hot [9, 56, 30] baked as a numpy constant.
_oh = np.zeros((9, PIX, IMG_FEAT), np.float32)
for _ky in range(3):
    for _kx in range(3):
        for _oy in range(CH):
            for _ox in range(CW):
                _oh[_ky * 3 + _kx, (_oy + _ky) * W + (_ox + _kx), _oy * CW + _ox] = 1.0
_IM2COL_ONEHOT = _oh


# ---------------------------------------------------------------------------
# Fused kernel: BN + PReLU + conv(im2col matmul) + TRNmultiscale + slow fusion
# + classifier + log_softmax.  Gridless; everything VMEM-resident.
# ---------------------------------------------------------------------------
def net_kernel(x_ref, bn_ref, wconv_ref, w1_ref, w2_ref, fw_ref, bias_ref, out_ref):
    f32 = jnp.float32
    bf16 = jnp.bfloat16
    nb = out_ref.shape[0]          # batch size (static)
    nc = out_ref.shape[1]          # num_class (static)

    # --- BatchNorm2d (eval, folded) + PReLU in f32, per-group broadcast ---
    x = x_ref[...]                                              # [3B, 224]
    rows = jax.lax.broadcasted_iota(jnp.int32, x.shape, 0)      # row index

    def per_row(base):
        r0 = bn_ref[base + 0:base + 1, :]
        r1 = bn_ref[base + 1:base + 2, :]
        r2 = bn_ref[base + 2:base + 3, :]
        return jnp.where(rows < nb, r0, jnp.where(rows < 2 * nb, r1, r2))

    scale = per_row(0)
    shift = per_row(NUM_GROUPS)
    alpha = per_row(2 * NUM_GROUPS)
    y = x * scale + shift
    y = jnp.where(y >= 0.0, y, alpha * y)

    # --- shared 3x3 valid conv as block-diag im2col matmul -> [3B, 128] ---
    feats = jnp.dot(y.astype(bf16), wconv_ref[...], preferred_element_type=f32)
    feats = feats + bias_ref[1:2, B_CONV_OFF:B_CONV_OFF + ROW_FEAT_P]

    # --- TRNmultiscale: ReLU -> wide FC (7 relations along N) -> ReLU -> stacked FC ---
    g = jnp.maximum(feats, 0.0)
    h = jnp.dot(g.astype(bf16), w1_ref[...], preferred_element_type=f32) + bias_ref[0:1, :]
    h = jnp.maximum(h, 0.0)                                     # [3B, 1792]
    trn = (jnp.dot(h.astype(bf16), w2_ref[...], preferred_element_type=f32)
           + bias_ref[1:2, B_TRN2_OFF:B_TRN2_OFF + TRN_OUT])    # [3B, 64]

    # --- slow fusion: block-diagonal fused dots (2 dots instead of 4) ---
    g0 = trn[0:nb]
    g1 = trn[nb:2 * nb]
    g2 = trn[2 * nb:3 * nb]

    cat01 = jnp.concatenate([g0, g1], axis=-1)                  # [B, 128]
    z1 = (jnp.dot(cat01.astype(bf16), fw_ref[:, 0:ROW_FEAT_P],
                  preferred_element_type=f32)
          + bias_ref[1:2, B_F1_OFF:B_F1_OFF + 2 * TRN_OUT])
    z1 = jnp.maximum(z1, 0.0)                                   # Dropout -> identity (eval)
    first_merge = z1[:, 0:TRN_OUT] + z1[:, TRN_OUT:2 * TRN_OUT]  # [B, 64]

    cat2 = jnp.concatenate([first_merge, g2], axis=-1)          # [B, 128]
    z2 = (jnp.dot(cat2.astype(bf16), fw_ref[:, ROW_FEAT_P:2 * ROW_FEAT_P],
                  preferred_element_type=f32)
          + bias_ref[1:2, B_F2_OFF:B_F2_OFF + 2 * FUSE])
    z2 = jnp.maximum(z2, 0.0)
    second_merge = z2[:, 0:FUSE] + z2[:, FUSE:2 * FUSE]          # [B, 64]

    # --- classifier + log_softmax(dim=1) ---
    logits = (jnp.dot(second_merge.astype(bf16),
                      fw_ref[0:FUSE, 2 * ROW_FEAT_P:2 * ROW_FEAT_P + nc],
                      preferred_element_type=f32)
              + bias_ref[1:2, B_CLS_OFF:B_CLS_OFF + nc])
    m = jnp.max(logits, axis=-1, keepdims=True)
    z = logits - m
    out_ref[...] = z - jnp.log(jnp.sum(jnp.exp(z), axis=-1, keepdims=True))


# ---------------------------------------------------------------------------
# One-time parameter folding into lane-dense, packed VMEM slabs (OFF the hot path).
# ---------------------------------------------------------------------------
def prepare_params(params, num_class):
    f32 = jnp.float32
    bf16 = jnp.bfloat16
    assert B_CLS_OFF + num_class <= WIDE, "num_class too large for bias pack"

    # eval-mode BN (module eps = 1e-4) folded to per-channel scale/shift
    inv = 1.0 / jnp.sqrt(params["bn_var"].astype(f32) + 1e-4)
    scale_c = params["bn_gamma"] * inv
    shift_c = params["bn_beta"] - params["bn_mean"] * scale_c
    alpha_c = params["prelu_alpha"]

    def group_rows(v):                                           # [12] -> [3, 224]
        v = jnp.broadcast_to(v.reshape(NUM_GROUPS, NUM_FRAMES, 1),
                             (NUM_GROUPS, NUM_FRAMES, PIX))
        return v.reshape(NUM_GROUPS, ROW_IN)

    bn_pack = jnp.concatenate(
        [group_rows(scale_c), group_rows(shift_c), group_rows(alpha_c)],
        axis=0).astype(f32)                                      # [9, 224]

    # 3x3 valid conv -> im2col matrix, feature dim padded 30->32, block-diag over frames
    w_im2col = jnp.einsum("k,kio->io", params["conv_w"].reshape(9).astype(f32),
                          jnp.asarray(_IM2COL_ONEHOT))           # [56, 30]
    w_im2col = jnp.pad(w_im2col, ((0, 0), (0, IMG_FEAT_P - IMG_FEAT)))   # [56, 32]
    w_conv = jnp.kron(jnp.eye(NUM_FRAMES, dtype=f32), w_im2col).astype(bf16)  # [224, 128]
    b_conv_frame = jnp.pad(jnp.broadcast_to(params["conv_b"].reshape(1, 1), (1, IMG_FEAT)),
                           ((0, 0), (0, IMG_FEAT_P - IMG_FEAT)))  # [1, 32]
    b_conv = jnp.tile(b_conv_frame, (1, NUM_FRAMES))              # [1, 128]

    # TRN: all 7 relation blocks stacked along hidden dim, K padded to 128
    w1_blocks, b1_blocks, w2_blocks = [], [], []
    b2_sum = jnp.zeros((1, TRN_OUT), f32)
    zero_piece = jnp.zeros((IMG_FEAT_P, BOTTLENECK), f32)
    for s in SCALES:
        w1 = jnp.pad(params[f"trn_w1_{s}"],
                     ((0, 0), (0, IMG_FEAT_P - IMG_FEAT), (0, 0)))  # [s, 32, 256]
        for rel in RELATIONS[s]:
            pieces = [w1[rel.index(fr)] if fr in rel else zero_piece
                      for fr in range(NUM_FRAMES)]
            w1_blocks.append(jnp.concatenate(pieces, axis=0))       # [128, 256]
            b1_blocks.append(params[f"trn_b1_{s}"])                 # [1, 256]
            w2_blocks.append(params[f"trn_w2_{s}"])                 # [256, 64]
            b2_sum = b2_sum + params[f"trn_b2_{s}"]
    w1_all = jnp.concatenate(w1_blocks, axis=1).astype(bf16)        # [128, 1792]
    b1_all = jnp.concatenate(b1_blocks, axis=1).astype(f32)         # [1, 1792]
    w2_all = jnp.concatenate(w2_blocks, axis=0).astype(bf16)        # [1792, 64]

    # slow-fusion + classifier weights packed into one [128, 256+C] slab
    def blockdiag(a, b):
        top = jnp.concatenate([a, jnp.zeros((a.shape[0], b.shape[1]), f32)], axis=1)
        bot = jnp.concatenate([jnp.zeros((b.shape[0], a.shape[1]), f32), b], axis=1)
        return jnp.concatenate([top, bot], axis=0)

    fw1 = blockdiag(params["fc1_0_w"], params["fc1_1_w"])           # [128, 128]
    fw2 = blockdiag(params["fc2_0_w"], params["fc2_1_w"])           # [128, 128]
    wc_pad = jnp.concatenate([params["cls_w"],
                              jnp.zeros((ROW_FEAT_P - FUSE, num_class), f32)], axis=0)
    fw = jnp.concatenate([fw1, fw2, wc_pad], axis=1).astype(bf16)   # [128, 256 + C]

    # all biases packed into one f32 [2, 1792] slab
    bias_pack = jnp.zeros((2, WIDE), f32)
    bias_pack = bias_pack.at[0, :].set(b1_all[0])
    bias_pack = bias_pack.at[1, B_CONV_OFF:B_CONV_OFF + ROW_FEAT_P].set(b_conv[0])
    bias_pack = bias_pack.at[1, B_F1_OFF:B_F1_OFF + 2 * TRN_OUT].set(
        jnp.concatenate([params["fc1_0_b"], params["fc1_1_b"]], axis=1)[0])
    bias_pack = bias_pack.at[1, B_F2_OFF:B_F2_OFF + 2 * FUSE].set(
        jnp.concatenate([params["fc2_0_b"], params["fc2_1_b"]], axis=1)[0])
    bias_pack = bias_pack.at[1, B_TRN2_OFF:B_TRN2_OFF + TRN_OUT].set(b2_sum[0])
    bias_pack = bias_pack.at[1, B_CLS_OFF:B_CLS_OFF + num_class].set(params["cls_b"][0])

    return {"bn": bn_pack, "w_conv": w_conv, "w1": w1_all, "w2": w2_all,
            "fw": fw, "bias": bias_pack}


# ---------------------------------------------------------------------------
# Per-forward wrapper: tiny input relayout + single pallas_call (7 operands).
# ---------------------------------------------------------------------------
def net_forward(x, folded):
    B = x.shape[0]
    num_class = folded["fw"].shape[1] - 2 * ROW_FEAT_P
    # Lane-dense [3B, 224]: rows = (group, batch), cols = frame-major pixels.
    x2d = jnp.transpose(x.reshape(B, NUM_GROUPS, NUM_FRAMES, PIX),
                        (1, 0, 2, 3)).reshape(NUM_GROUPS * B, ROW_IN).astype(jnp.float32)
    return pl.pallas_call(
        net_kernel,
        out_shape=jax.ShapeDtypeStruct((B, num_class), jnp.float32),
        in_specs=[pl.BlockSpec(memory_space=VMEM)] * 7,
        out_specs=pl.BlockSpec(memory_space=VMEM),
    )(x2d, folded["bn"], folded["w_conv"], folded["w1"], folded["w2"],
      folded["fw"], folded["bias"])


# ---------------------------------------------------------------------------
# Deterministic synthetic parameters (module layout, un-folded)
# ---------------------------------------------------------------------------
def init_params(key, num_class):
    keys = list(jax.random.split(key, 32))
    it = iter(keys)

    def nrm(shape, s=0.1):
        return s * jax.random.normal(next(it), shape, jnp.float32)

    p = {}
    p["bn_gamma"] = 1.0 + nrm((NUM_SEG,), 0.1)
    p["bn_beta"] = nrm((NUM_SEG,))
    p["bn_mean"] = nrm((NUM_SEG,))
    p["bn_var"] = 0.5 + jnp.abs(jax.random.normal(next(it), (NUM_SEG,), jnp.float32))
    p["prelu_alpha"] = 0.25 * jnp.ones((NUM_SEG,), jnp.float32)
    p["conv_w"] = nrm((3, 3), 0.3)
    p["conv_b"] = nrm((1,), 0.1)
    for s in SCALES:
        p[f"trn_w1_{s}"] = nrm((s, IMG_FEAT, BOTTLENECK))   # chunked [scale, 30, 256]
        p[f"trn_b1_{s}"] = nrm((1, BOTTLENECK))
        p[f"trn_w2_{s}"] = nrm((BOTTLENECK, TRN_OUT))
        p[f"trn_b2_{s}"] = nrm((1, TRN_OUT))
    for name, (din, dout) in [("fc1_0", (TRN_OUT, TRN_OUT)), ("fc1_1", (TRN_OUT, TRN_OUT)),
                              ("fc2_0", (TRN_OUT, FUSE)), ("fc2_1", (TRN_OUT, FUSE)),
                              ("cls", (FUSE, 0))]:
        dout = dout if dout else num_class
        p[f"{name}_w"] = nrm((din, dout))
        p[f"{name}_b"] = nrm((1, dout))
    return p


if __name__ == "__main__":
    B = 2
    NUM_CLASS = 10
    key = jax.random.PRNGKey(0)
    kx, kp = jax.random.split(key)
    x = jax.random.normal(kx, (B, NUM_SEG, H, W), jnp.float32)
    params = init_params(kp, NUM_CLASS)

    # One-time folding (cached outside the hot path).
    folded = prepare_params(params, NUM_CLASS)
    folded = jax.tree_util.tree_map(jax.block_until_ready, folded)

    fwd = jax.jit(net_forward)
    out = jax.block_until_ready(fwd(x, folded))
    assert out.shape == (B, NUM_CLASS)
    assert bool(jnp.all(jnp.isfinite(out)))
    print("KERNEL_OK")
</pallas_src>

<mosaic_0001>
module attributes {stable_mosaic.version = 11 : i64} {
  func.func @net_kernel(%arg0: memref<6x224xf32, #tpu.memory_space<vmem>>, %arg1: memref<9x224xf32, #tpu.memory_space<vmem>>, %arg2: memref<224x128xbf16, #tpu.memory_space<vmem>>, %arg3: memref<128x1792xbf16, #tpu.memory_space<vmem>>, %arg4: memref<1792x64xbf16, #tpu.memory_space<vmem>>, %arg5: memref<128x266xbf16, #tpu.memory_space<vmem>>, %arg6: memref<2x1792xf32, #tpu.memory_space<vmem>>, %arg7: memref<2x10xf32, #tpu.memory_space<vmem>>) attributes {dimension_semantics = [], scalar_prefetch = 0 : i64, scratch_operands = 0 : i64, tpu.core_type = #tpu.core_type<tc>} {
    %c0 = arith.constant 0 : index
    %c0_0 = arith.constant 0 : index
    %0 = vector.load %arg0[%c0, %c0_0] : memref<6x224xf32, #tpu.memory_space<vmem>>, vector<6x224xf32>
    %1 = tpu.iota {dimensions = array<i32: 0>} : vector<6x224xi32>
    %c0_1 = arith.constant 0 : index
    %c0_2 = arith.constant 0 : index
    %2 = vector.load %arg1[%c0_1, %c0_2] : memref<9x224xf32, #tpu.memory_space<vmem>>, vector<1x224xf32>
    %c1 = arith.constant 1 : index
    %c0_3 = arith.constant 0 : index
    %3 = vector.load %arg1[%c1, %c0_3] : memref<9x224xf32, #tpu.memory_space<vmem>>, vector<1x224xf32>
    %c2 = arith.constant 2 : index
    %c0_4 = arith.constant 0 : index
    %4 = vector.load %arg1[%c2, %c0_4] : memref<9x224xf32, #tpu.memory_space<vmem>>, vector<1x224xf32>
    %c2_i32 = arith.constant 2 : i32
    %5 = vector.broadcast %c2_i32 : i32 to vector<6x224xi32>
    %6 = arith.cmpi slt, %1, %5 : vector<6x224xi32>
    %c4_i32 = arith.constant 4 : i32
    %7 = vector.broadcast %c4_i32 : i32 to vector<6x224xi32>
    %8 = arith.cmpi slt, %1, %7 : vector<6x224xi32>
    %9 = vector.shape_cast %3 : vector<1x224xf32> to vector<1x224xf32>
    %10 = vector.broadcast %9 : vector<1x224xf32> to vector<6x224xf32>
    %11 = vector.shape_cast %4 : vector<1x224xf32> to vector<1x224xf32>
    %12 = vector.broadcast %11 : vector<1x224xf32> to vector<6x224xf32>
    %13 = arith.select %8, %10, %12 : vector<6x224xi1>, vector<6x224xf32>
    %14 = vector.shape_cast %2 : vector<1x224xf32> to vector<1x224xf32>
    %15 = vector.broadcast %14 : vector<1x224xf32> to vector<6x224xf32>
    %16 = arith.select %6, %15, %13 : vector<6x224xi1>, vector<6x224xf32>
    %c3 = arith.constant 3 : index
    %c0_5 = arith.constant 0 : index
    %17 = vector.load %arg1[%c3, %c0_5] : memref<9x224xf32, #tpu.memory_space<vmem>>, vector<1x224xf32>
    %c4 = arith.constant 4 : index
    %c0_6 = arith.constant 0 : index
    %18 = vector.load %arg1[%c4, %c0_6] : memref<9x224xf32, #tpu.memory_space<vmem>>, vector<1x224xf32>
    %c5 = arith.constant 5 : index
    %c0_7 = arith.constant 0 : index
    %19 = vector.load %arg1[%c5, %c0_7] : memref<9x224xf32, #tpu.memory_space<vmem>>, vector<1x224xf32>
    %c2_i32_8 = arith.constant 2 : i32
    %20 = vector.broadcast %c2_i32_8 : i32 to vector<6x224xi32>
    %21 = arith.cmpi slt, %1, %20 : vector<6x224xi32>
    %c4_i32_9 = arith.constant 4 : i32
    %22 = vector.broadcast %c4_i32_9 : i32 to vector<6x224xi32>
    %23 = arith.cmpi slt, %1, %22 : vector<6x224xi32>
    %24 = vector.shape_cast %18 : vector<1x224xf32> to vector<1x224xf32>
    %25 = vector.broadcast %24 : vector<1x224xf32> to vector<6x224xf32>
    %26 = vector.shape_cast %19 : vector<1x224xf32> to vector<1x224xf32>
    %27 = vector.broadcast %26 : vector<1x224xf32> to vector<6x224xf32>
    %28 = arith.select %23, %25, %27 : vector<6x224xi1>, vector<6x224xf32>
    %29 = vector.shape_cast %17 : vector<1x224xf32> to vector<1x224xf32>
    %30 = vector.broadcast %29 : vector<1x224xf32> to vector<6x224xf32>
    %31 = arith.select %21, %30, %28 : vector<6x224xi1>, vector<6x224xf32>
    %c6 = arith.constant 6 : index
    %c0_10 = arith.constant 0 : index
    %32 = vector.load %arg1[%c6, %c0_10] : memref<9x224xf32, #tpu.memory_space<vmem>>, vector<1x224xf32>
    %c7 = arith.constant 7 : index
    %c0_11 = arith.constant 0 : index
    %33 = vector.load %arg1[%c7, %c0_11] : memref<9x224xf32, #tpu.memory_space<vmem>>, vector<1x224xf32>
    %c8 = arith.constant 8 : index
    %c0_12 = arith.constant 0 : index
    %34 = vector.load %arg1[%c8, %c0_12] : memref<9x224xf32, #tpu.memory_space<vmem>>, vector<1x224xf32>
    %c2_i32_13 = arith.constant 2 : i32
    %35 = vector.broadcast %c2_i32_13 : i32 to vector<6x224xi32>
    %36 = arith.cmpi slt, %1, %35 : vector<6x224xi32>
    %c4_i32_14 = arith.constant 4 : i32
    %37 = vector.broadcast %c4_i32_14 : i32 to vector<6x224xi32>
    %38 = arith.cmpi slt, %1, %37 : vector<6x224xi32>
    %39 = vector.shape_cast %33 : vector<1x224xf32> to vector<1x224xf32>
    %40 = vector.broadcast %39 : vector<1x224xf32> to vector<6x224xf32>
    %41 = vector.shape_cast %34 : vector<1x224xf32> to vector<1x224xf32>
    %42 = vector.broadcast %41 : vector<1x224xf32> to vector<6x224xf32>
    %43 = arith.select %38, %40, %42 : vector<6x224xi1>, vector<6x224xf32>
    %44 = vector.shape_cast %32 : vector<1x224xf32> to vector<1x224xf32>
    %45 = vector.broadcast %44 : vector<1x224xf32> to vector<6x224xf32>
    %46 = arith.select %36, %45, %43 : vector<6x224xi1>, vector<6x224xf32>
    %47 = arith.mulf %0, %16 : vector<6x224xf32>
    %48 = arith.addf %47, %31 : vector<6x224xf32>
    %cst = arith.constant 0.000000e+00 : f32
    %49 = vector.broadcast %cst : f32 to vector<6x224xf32>
    %50 = arith.cmpf oge, %48, %49 : vector<6x224xf32>
    %51 = arith.mulf %46, %48 : vector<6x224xf32>
    %52 = arith.select %50, %48, %51 : vector<6x224xi1>, vector<6x224xf32>
    %53 = arith.truncf %52 : vector<6x224xf32> to vector<6x224xbf16>
    %c0_15 = arith.constant 0 : index
    %c0_16 = arith.constant 0 : index
    %54 = vector.load %arg2[%c0_15, %c0_16] : memref<224x128xbf16, #tpu.memory_space<vmem>>, vector<224x128xbf16>
    %cst_17 = arith.constant dense<0.000000e+00> : vector<6x128xf32>
    %55 = tpu.matmul %53, %54, %cst_17 {dimension_numbers = #tpu.dot_dimension_numbers<[1], [0], [0], [1], [0, 0, 1, 1], [], []>} : vector<6x224xbf16>, vector<224x128xbf16>, vector<6x128xf32> -> vector<6x128xf32>
    %c1_18 = arith.constant 1 : index
    %c0_19 = arith.constant 0 : index
    %56 = vector.load %arg6[%c1_18, %c0_19] : memref<2x1792xf32, #tpu.memory_space<vmem>>, vector<1x128xf32>
    %57 = vector.broadcast %56 : vector<1x128xf32> to vector<6x128xf32>
    %58 = arith.addf %55, %57 : vector<6x128xf32>
    %cst_20 = arith.constant 0.000000e+00 : f32
    %59 = vector.broadcast %cst_20 : f32 to vector<6x128xf32>
    %60 = arith.maximumf %58, %59 : vector<6x128xf32>
    %61 = arith.truncf %60 : vector<6x128xf32> to vector<6x128xbf16>
    %c0_21 = arith.constant 0 : index
    %c0_22 = arith.constant 0 : index
    %62 = vector.load %arg3[%c0_21, %c0_22] : memref<128x1792xbf16, #tpu.memory_space<vmem>>, vector<128x1792xbf16>
    %cst_23 = arith.constant dense<0.000000e+00> : vector<6x1792xf32>
    %63 = tpu.matmul %61, %62, %cst_23 {dimension_numbers = #tpu.dot_dimension_numbers<[1], [0], [0], [1], [0, 0, 1, 1], [], []>} : vector<6x128xbf16>, vector<128x1792xbf16>, vector<6x1792xf32> -> vector<6x1792xf32>
    %c0_24 = arith.constant 0 : index
    %c0_25 = arith.constant 0 : index
    %64 = vector.load %arg6[%c0_24, %c0_25] : memref<2x1792xf32, #tpu.memory_space<vmem>>, vector<1x1792xf32>
    %65 = vector.broadcast %64 : vector<1x1792xf32> to vector<6x1792xf32>
    %66 = arith.addf %63, %65 : vector<6x1792xf32>
    %cst_26 = arith.constant 0.000000e+00 : f32
    %67 = vector.broadcast %cst_26 : f32 to vector<6x1792xf32>
    %68 = arith.maximumf %66, %67 : vector<6x1792xf32>
    %69 = arith.truncf %68 : vector<6x1792xf32> to vector<6x1792xbf16>
    %c0_27 = arith.constant 0 : index
    %c0_28 = arith.constant 0 : index
    %70 = vector.load %arg4[%c0_27, %c0_28] : memref<1792x64xbf16, #tpu.memory_space<vmem>>, vector<1792x64xbf16>
    %cst_29 = arith.constant dense<0.000000e+00> : vector<6x64xf32>
    %71 = tpu.matmul %69, %70, %cst_29 {dimension_numbers = #tpu.dot_dimension_numbers<[1], [0], [0], [1], [0, 0, 1, 1], [], []>} : vector<6x1792xbf16>, vector<1792x64xbf16>, vector<6x64xf32> -> vector<6x64xf32>
    %c1_30 = arith.constant 1 : index
    %c384 = arith.constant 384 : index
    %72 = vector.load %arg6[%c1_30, %c384] : memref<2x1792xf32, #tpu.memory_space<vmem>>, vector<1x64xf32>
    %73 = vector.broadcast %72 : vector<1x64xf32> to vector<6x64xf32>
    %74 = arith.addf %71, %73 : vector<6x64xf32>
    %75 = vector.extract_strided_slice %74 {offsets = [0, 0], sizes = [2, 64], strides = [1, 1]} : vector<6x64xf32> to vector<2x64xf32>
    %76 = vector.extract_strided_slice %74 {offsets = [2, 0], sizes = [2, 64], strides = [1, 1]} : vector<6x64xf32> to vector<2x64xf32>
    %77 = vector.extract_strided_slice %74 {offsets = [4, 0], sizes = [2, 64], strides = [1, 1]} : vector<6x64xf32> to vector<2x64xf32>
    %78 = tpu.concatenate %75, %76 in 1 : vector<2x64xf32>, vector<2x64xf32> -> vector<2x128xf32>
    %79 = arith.truncf %78 : vector<2x128xf32> to vector<2x128xbf16>
    %c0_31 = arith.constant 0 : index
    %c0_32 = arith.constant 0 : index
    %80 = vector.load %arg5[%c0_31, %c0_32] : memref<128x266xbf16, #tpu.memory_space<vmem>>, vector<128x128xbf16>
    %cst_33 = arith.constant dense<0.000000e+00> : vector<2x128xf32>
    %81 = tpu.matmul %79, %80, %cst_33 {dimension_numbers = #tpu.dot_dimension_numbers<[1], [0], [0], [1], [0, 0, 1, 1], [], []>} : vector<2x128xbf16>, vector<128x128xbf16>, vector<2x128xf32> -> vector<2x128xf32>
    %c1_34 = arith.constant 1 : index
    %c128 = arith.constant 128 : index
    %82 = vector.load %arg6[%c1_34, %c128] : memref<2x1792xf32, #tpu.memory_space<vmem>>, vector<1x128xf32>
    %83 = vector.broadcast %82 : vector<1x128xf32> to vector<2x128xf32>
    %84 = arith.addf %81, %83 : vector<2x128xf32>
    %cst_35 = arith.constant 0.000000e+00 : f32
    %85 = vector.broadcast %cst_35 : f32 to vector<2x128xf32>
    %86 = arith.maximumf %84, %85 : vector<2x128xf32>
    %87 = vector.extract_strided_slice %86 {offsets = [0, 0], sizes = [2, 64], strides = [1, 1]} : vector<2x128xf32> to vector<2x64xf32>
    %88 = vector.extract_strided_slice %86 {offsets = [0, 64], sizes = [2, 64], strides = [1, 1]} : vector<2x128xf32> to vector<2x64xf32>
    %89 = arith.addf %87, %88 : vector<2x64xf32>
    %90 = tpu.concatenate %89, %77 in 1 : vector<2x64xf32>, vector<2x64xf32> -> vector<2x128xf32>
    %91 = arith.truncf %90 : vector<2x128xf32> to vector<2x128xbf16>
    %c0_36 = arith.constant 0 : index
    %c128_37 = arith.constant 128 : index
    %92 = vector.load %arg5[%c0_36, %c128_37] : memref<128x266xbf16, #tpu.memory_space<vmem>>, vector<128x128xbf16>
    %cst_38 = arith.constant dense<0.000000e+00> : vector<2x128xf32>
    %93 = tpu.matmul %91, %92, %cst_38 {dimension_numbers = #tpu.dot_dimension_numbers<[1], [0], [0], [1], [0, 0, 1, 1], [], []>} : vector<2x128xbf16>, vector<128x128xbf16>, vector<2x128xf32> -> vector<2x128xf32>
    %c1_39 = arith.constant 1 : index
    %c256 = arith.constant 256 : index
    %94 = vector.load %arg6[%c1_39, %c256] : memref<2x1792xf32, #tpu.memory_space<vmem>>, vector<1x128xf32>
    %95 = vector.broadcast %94 : vector<1x128xf32> to vector<2x128xf32>
    %96 = arith.addf %93, %95 : vector<2x128xf32>
    %cst_40 = arith.constant 0.000000e+00 : f32
    %97 = vector.broadcast %cst_40 : f32 to vector<2x128xf32>
    %98 = arith.maximumf %96, %97 : vector<2x128xf32>
    %99 = vector.extract_strided_slice %98 {offsets = [0, 0], sizes = [2, 64], strides = [1, 1]} : vector<2x128xf32> to vector<2x64xf32>
    %100 = vector.extract_strided_slice %98 {offsets = [0, 64], sizes = [2, 64], strides = [1, 1]} : vector<2x128xf32> to vector<2x64xf32>
    %101 = arith.addf %99, %100 : vector<2x64xf32>
    %102 = arith.truncf %101 : vector<2x64xf32> to vector<2x64xbf16>
    %c0_41 = arith.constant 0 : index
    %c256_42 = arith.constant 256 : index
    %103 = vector.load %arg5[%c0_41, %c256_42] : memref<128x266xbf16, #tpu.memory_space<vmem>>, vector<64x10xbf16>
    %cst_43 = arith.constant dense<0.000000e+00> : vector<2x10xf32>
    %104 = tpu.matmul %102, %103, %cst_43 {dimension_numbers = #tpu.dot_dimension_numbers<[1], [0], [0], [1], [0, 0, 1, 1], [], []>} : vector<2x64xbf16>, vector<64x10xbf16>, vector<2x10xf32> -> vector<2x10xf32>
    %c1_44 = arith.constant 1 : index
    %c512 = arith.constant 512 : index
    %105 = vector.load %arg6[%c1_44, %c512] : memref<2x1792xf32, #tpu.memory_space<vmem>>, vector<1x10xf32>
    %106 = vector.broadcast %105 : vector<1x10xf32> to vector<2x10xf32>
    %107 = arith.addf %104, %106 : vector<2x10xf32>
    %cst_45 = arith.constant dense<0xFF800000> : vector<2xf32>
    %108 = vector.multi_reduction <maximumf>, %107, %cst_45 [1] : vector<2x10xf32> to vector<2xf32>
    %109 = vector.shape_cast %108 : vector<2xf32> to vector<2x1xf32>
    %110 = vector.broadcast %109 : vector<2x1xf32> to vector<2x10xf32>
    %111 = arith.subf %107, %110 : vector<2x10xf32>
    %112 = math.exp %111 : vector<2x10xf32>
    %cst_46 = arith.constant dense<0.000000e+00> : vector<2xf32>
    %113 = vector.multi_reduction <add>, %112, %cst_46 [1] : vector<2x10xf32> to vector<2xf32>
    %114 = vector.shape_cast %113 : vector<2xf32> to vector<2x1xf32>
    %115 = math.log %114 : vector<2x1xf32>
    %116 = vector.broadcast %115 : vector<2x1xf32> to vector<2x10xf32>
    %117 = arith.subf %111, %116 : vector<2x10xf32>
    %c0_47 = arith.constant 0 : index
    %c0_48 = arith.constant 0 : index
    %118 = vector.load %arg7[%c0_47, %c0_48] : memref<2x10xf32, #tpu.memory_space<vmem>>, vector<2x10xf32>
    tpu.vector_store %arg7[%c0_47, %c0_48], %117 {strides = array<i32>} : memref<2x10xf32, #tpu.memory_space<vmem>>, vector<2x10xf32>,
    return
  }
}

</mosaic_0001>

<bundles_post_ra>
// kernel: net_forward.1
= control target key start
LH: loop header
LB: loop body
LE: loop exit
PB: predicated region body
PF: predicated region fallthrough
CT: control target
= control target key end

     0   :  { %v3783_v1 = vmov 0   ;;  %v30_v3 = vlaneseq  ;;  %vm291_vm3 = vcmask 785408   ;;  %s4872_s0 = inlined_call_operand.vmem [shape: f32[6,224], index: 0, kind: input, shape index: {}]   ;;  %s4873_s1 = inlined_call_operand.vmem [shape: f32[9,224], index: 1, kind: input, shape index: {}]   ;;  %s4874_s2 = inlined_call_operand.vmem [shape: bf16[224,128], index: 2, kind: input, shape index: {}]   ;;  %s4875_s3 = inlined_call_operand.vmem [shape: bf16[128,1792], index: 3, kind: input, shape index: {}]   ;;  %s4876_s4 = inlined_call_operand.vmem [shape: bf16[1792,64], index: 4, kind: input, shape index: {}]   ;;  %s4877_s5 = inlined_call_operand.vmem [shape: bf16[128,266], index: 5, kind: input, shape index: {}]   ;;  %s4878_s6 = inlined_call_operand.vmem [shape: f32[2,1792], index: 6, kind: input, shape index: {}]   ;;  %s4879_s7 = inlined_call_operand.hbm [shape: f32[2,10], index: 7, kind: output, shape index: {}]  }
   0x1   :  { %v3441_v0 = vld [vmem:[%s4874_s2] sm:$0xff]   ;;  %295 = vmatprep.subr.bf16.mxu0 %v3783_v1  ;;  %1116 = vmatprep.mubr.bf16.mxu1 %v3783_v1  ;;  %v3442_v2 = vld [vmem:[%s4874_s2 + $0x8] sm:$0xff]   ;;  %v3443_v4 = vld [vmem:[%s4874_s2 + $0x10] sm:$0xff]  }
   0x2   :  { %296 = vmatpush1.bf16.msra.mxu0 %v3441_v0  ;;  %v3841_v5 = vshrl.u32 %v30_v3, 7  ;;  %v3444_v6 = vld [vmem:[%s4874_s2 + $0x18] sm:$0xff]   ;;  %v3445_v8 = vld [vmem:[%s4874_s2 + $0x20] sm:$0xff]   ;;  %v29_v10 = vld [vmem:[%s4872_s0 + $0x8] sm:$0x3f] }
   0x3   :  { %297 = vmatprep.subr.bf16.mxu0 %v3783_v1  ;;  %v3856_v9 = vld [vmem:[%s4873_s1] ss:$8 sm:$0x3]  ;;  %v3867_v11 = vld [vmem:[%s4873_s1 + $0x1] ss:$8 sm:$0x3] }
   0x4   :  { %v3848_v7 = vsub.s32 1, %v3841_v5  ;;  %vm37_vm0 = vcmp.lt.s32.totalorder %v3841_v5, 2  ;;  %vm38_vm1 = vcmp.lt.s32.totalorder %v3841_v5, 4  ;;  %v3872_v12 = vld [vmem:[%s4873_s1 + $0x2] ss:$8 sm:$0x3] }
   0x5   :  { %v3446_v14 = vld [vmem:[%s4874_s2 + $0x28] sm:$0xff]   ;;  %v3919_v26 = vld [vmem:[%s4873_s1 + $0x10] ss:$8 sm:$0x3]  ;;  %v3455_v29 = vld [vmem:[%s4875_s3 + $0x4] ss:$56 sps:$4 sm:$0xff]  }
   0x6   :  { %298 = vmatpush1.bf16.msra.mxu0 %v3442_v2  ;;  %v71_v13 = vrot.slane %v3856_v9, %v3848_v7  ;;  %v47_v15 = vrot.slane %v3867_v11, %v3848_v7  ;;  %v58_v16 = vrot.slane %v3872_v12, %v3848_v7  ;;  %v3886_v17 = vld [vmem:[%s4873_s1 + $0x3] ss:$8 sm:$0x3]  ;;  %v3891_v18 = vld [vmem:[%s4873_s1 + $0x4] ss:$8 sm:$0x3]  ;;  %v144_v31 = vrot.slane %v3919_v26, %v3848_v7 }
   0x7   :  { %299 = vmatprep.subr.bf16.mxu0 %v3783_v1  ;;  %v3896_v19 = vld [vmem:[%s4873_s1 + $0x5] ss:$8 sm:$0x3]  ;;  %v90_v20 = vrot.slane %v3891_v18, %v3848_v7  ;;  %v114_v21 = vrot.slane %v3886_v17, %v3848_v7  ;;  %v3905_v22 = vld [vmem:[%s4873_s1 + $0x6] ss:$8 sm:$0x3]  ;;  %1084 = vmatprep.subr.bf16.mxu1 %v3455_v29 }
   0x8   :  { %v62_v23 = vsel %vm38_vm1, %v47_v15, %v58_v16  ;;  %v101_v24 = vrot.slane %v3896_v19, %v3848_v7  ;;  %v3914_v25 = vld [vmem:[%s4873_s1 + $0x7] ss:$8 sm:$0x3]  ;;  %v157_v32 = vrot.slane %v3905_v22, %v3848_v7  ;;  %v3447_v34 = vld [vmem:[%s4874_s2 + $0x30] sm:$0xff]   ;;  %v3460_v36 = vld [vmem:[%s4875_s3] ss:$56 sps:$4 sm:$0xff]  }
   0x9   :  { %v75_v27 = vsel %vm37_vm0, %v71_v13, %v62_v23  ;;  %v133_v28 = vrot.slane %v3914_v25, %v3848_v7  ;;  %v3461_v39 = vld [vmem:[%s4875_s3 + $0x74] ss:$56 sps:$4 sm:$0xff]   ;;  %1085 = vmatpush1.bf16.msra.mxu1 %v3460_v36  ;;  %v3952_v41 = vsub.s32 0, %v3841_v5  ;;  %v3466_v43 = vld [vmem:[%s4875_s3 + $0x70] ss:$56 sps:$4 sm:$0xff]   ;;  %v3448_v45 = vld [vmem:[%s4874_s2 + $0x38] sm:$0xff]  }
   0xa   :  { %300 = vmatpush1.bf16.msra.mxu0 %v3443_v4  ;;  %v105_v30 = vsel %vm38_vm1, %v90_v20, %v101_v24  ;;  %v163_v33 = vmul.f32 %v75_v27, %v29_v10  ;;  %1086 = vmatprep.subr.bf16.mxu1 %v3461_v39  ;;  %v3467_v44 = vld [vmem:[%s4875_s3 + $0xe4] ss:$56 sps:$4 sm:$0xff]   ;;  %v3472_v48 = vld [vmem:[%s4875_s3 + $0xe0] ss:$56 sps:$4 sm:$0xff]   ;;  %v3473_v51 = vld [vmem:[%s4875_s3 + $0x154] ss:$56 sps:$4 sm:$0xff]  }
   0xb   :  { %301 = vmatprep.subr.bf16.mxu0 %v3783_v1  ;;  %v118_v35 = vsel %vm37_vm0, %v114_v21, %v105_v30  ;;  %v148_v37 = vsel %vm38_vm1, %v133_v28, %v144_v31  ;;  %v43_v49 = vrot.slane %v3867_v11, %v3952_v41  ;;  %v54_v50 = vrot.slane %v3872_v12, %v3952_v41  ;;  %v3449_v52 = vld [vmem:[%s4874_s2 + $0x40] sm:$0xff]   ;;  %v3478_v54 = vld [vmem:[%s4875_s3 + $0x150] ss:$56 sps:$4 sm:$0xff]   ;;  %v3485_v4 = vld [vmem:[%s4875_s3 + $0x234] ss:$56 sps:$4 sm:$0xff]  }
   0xc   :  { %v165_v38 = vadd.f32 %v163_v33, %v118_v35  ;;  %v161_v40 = vsel %vm37_vm0, %v157_v32, %v148_v37  ;;  %v67_v53 = vrot.slane %v3856_v9, %v3952_v41  ;;  %v86_v55 = vrot.slane %v3891_v18, %v3952_v41  ;;  %v3479_v58 = vld [vmem:[%s4875_s3 + $0x1c4] ss:$56 sps:$4 sm:$0xff]   ;;  %v3450_v59 = vld [vmem:[%s4874_s2 + $0x48] sm:$0xff]   ;;  %v3484_v63 = vld [vmem:[%s4875_s3 + $0x1c0] ss:$56 sps:$4 sm:$0xff]  }
   0xd   :  { %1087 = vmatpush1.bf16.msra.mxu1 %v3466_v43  ;;  %v97_v56 = vrot.slane %v3896_v19, %v3952_v41  ;;  %v61_v57 = vsel %vm38_vm1, %v43_v49, %v54_v50  ;;  %v28_v60 = vld [vmem:[%s4872_s0] sm:$0x3f]  ;;  %v110_v61 = vrot.slane %v3886_v17, %v3952_v41  ;;  %v129_v0 = vrot.slane %v3914_v25, %v3952_v41  ;;  %v3452_v13 = vld [vmem:[%s4874_s2 + $0x58] sm:$0xff]   ;;  %v3454_v20 = vld [vmem:[%s4874_s2 + $0x68] sm:$0xff]  }
   0xe   :  { %302 = vmatpush1.bf16.msra.mxu0 %v3444_v6  ;;  %vm167_vm2 = vcmp.ge.f32.partialorder %v165_v38, 0.0  ;;  %v169_v42 = vmul.f32 %v165_v38, %v161_v40  ;;  %1088 = vmatprep.subr.bf16.mxu1 %v3467_v44  ;;  %v74_v62 = vsel %vm37_vm0, %v67_v53, %v61_v57  ;;  %v140_v2 = vrot.slane %v3919_v26, %v3952_v41  ;;  %v3451_v6 = vld [vmem:[%s4874_s2 + $0x50] sm:$0xff]   ;;  %v3491_v10 = vld [vmem:[%s4875_s3 + $0x2a4] ss:$56 sps:$4 sm:$0xff]   ;;  %v3496_v15 = vld [vmem:[%s4875_s3 + $0x2a0] ss:$56 sps:$4 sm:$0xff]  }
   0xf   :  { %303 = vmatprep.subr.bf16.mxu0 %v3783_v1  ;;  %v104_v3 = vsel %vm38_vm1, %v86_v55, %v97_v56  ;;  %v162_v9 = vmul.f32 %v74_v62, %v28_v60  ;;  %v153_v11 = vrot.slane %v3905_v22, %v3952_v41  ;;  %v3453_v18 = vld [vmem:[%s4874_s2 + $0x60] sm:$0xff]   ;;  %v3459_v21 = vld [vmem:[%s4875_s3 + $0x14] ss:$56 sps:$4 sm:$0xff]   ;;  %v3457_v23 = vld [vmem:[%s4875_s3 + $0x10] ss:$56 sps:$4 sm:$0xff]  }
  0x10   :  { %v171_v46 = vsel %vm167_vm2, %v165_v38, %v169_v42  ;;  %v117_v12 = vsel %vm37_vm0, %v110_v61, %v104_v3  ;;  %v3465_v25 = vld [vmem:[%s4875_s3 + $0x84] ss:$56 sps:$4 sm:$0xff]   ;;  %v3463_v26 = vld [vmem:[%s4875_s3 + $0x80] ss:$56 sps:$4 sm:$0xff]   ;;  %v3471_v27 = vld [vmem:[%s4875_s3 + $0xf4] ss:$56 sps:$4 sm:$0xff]  }
  0x11   :  { %v173_v47 = vpack.c.bf16 %v171_v46, %v171_v46  ;;  %1089 = vmatpush1.bf16.msra.mxu1 %v3472_v48  ;;  %v164_v16 = vadd.f32 %v162_v9, %v117_v12  ;;  %v3469_v28 = vld [vmem:[%s4875_s3 + $0xf0] ss:$56 sps:$4 sm:$0xff]   ;;  %v3477_v29 = vld [vmem:[%s4875_s3 + $0x164] ss:$56 sps:$4 sm:$0xff]   ;;  %v3475_v30 = vld [vmem:[%s4875_s3 + $0x160] ss:$56 sps:$4 sm:$0xff]  }
  0x12   :  { %304 = vmatpush1.bf16.msra.mxu0 %v3445_v8  ;;  %1090 = vmatprep.subr.bf16.mxu1 %v3473_v51  ;;  %v3490_v8 = vld [vmem:[%s4875_s3 + $0x230] ss:$56 sps:$4 sm:$0xff]   ;;  %v3483_v31 = vld [vmem:[%s4875_s3 + $0x1d4] ss:$56 sps:$4 sm:$0xff]   ;;  %v3489_v33 = vld [vmem:[%s4875_s3 + $0x244] ss:$56 sps:$4 sm:$0xff]  }
  0x13   :  { %305 = vmatprep.subr.bf16.mxu0 %v3783_v1  ;;  %2956 = vmatprep.mubr.msk.bf16.mxu0 %vm291_vm3, %v173_v47  ;;  %vm166_vm4 = vcmp.ge.f32.partialorder %v164_v16, 0.0  ;;  %v3481_v32 = vld [vmem:[%s4875_s3 + $0x1d0] ss:$56 sps:$4 sm:$0xff]   ;;  %v3495_v35 = vld [vmem:[%s4875_s3 + $0x2b4] ss:$56 sps:$4 sm:$0xff]  }
  0x14   :  { %v3493_v36 = vld [vmem:[%s4875_s3 + $0x2b0] ss:$56 sps:$4 sm:$0xff]   ;;  %v3497_v37 = vld [vmem:[%s4875_s3 + $0x314] ss:$56 sps:$4 sm:$0xff]   ;;  %v3501_v38 = vld [vmem:[%s4875_s3 + $0x324] ss:$56 sps:$4 sm:$0xff]  }
  0x15   :  { %1091 = vmatpush1.bf16.msra.mxu1 %v3478_v54  ;;  %v3499_v39 = vld [vmem:[%s4875_s3 + $0x320] ss:$56 sps:$4 sm:$0xff]   ;;  %v3502_v40 = vld [vmem:[%s4875_s3 + $0x310] ss:$56 sps:$4 sm:$0xff]   ;;  %v3505_v42 = vld [vmem:[%s4875_s3 + $0xc] ss:$56 sps:$4 sm:$0xff]  }
  0x16   :  { %306 = vmatpush1.bf16.msra.mxu0 %v3446_v14  ;;  %1092 = vmatprep.subr.bf16.mxu1 %v3479_v58  ;;  %v147_v14 = vsel %vm38_vm1, %v129_v0, %v140_v2  ;;  %v3508_v43 = vld [vmem:[%s4875_s3 + $0x24] ss:$56 sps:$4 sm:$0xff]  }
  0x17   :  { %307 = vmatprep.subr.bf16.mxu0 %v3783_v1  ;;  %v160_v17 = vsel %vm37_vm0, %v153_v11, %v147_v14 }
  0x18   :  { %v168_v19 = vmul.f32 %v164_v16, %v160_v17 }
  0x19   :  { %1093 = vmatpush1.bf16.msra.mxu1 %v3484_v63 }
  0x1a   :  { %308 = vmatpush1.bf16.msra.mxu0 %v3447_v34  ;;  %1094 = vmatprep.subr.bf16.mxu1 %v3485_v4  ;;  %v170_v22 = vsel %vm166_vm4, %v164_v16, %v168_v19  ;;  %v3487_v34 = vld [vmem:[%s4875_s3 + $0x240] ss:$56 sps:$4 sm:$0xff]  }
  0x1b   :  { %309 = vmatprep.subr.bf16.mxu0 %v3783_v1  ;;  %v172_v24 = vpack.c.bf16 %v170_v22, %v170_v22 }
  0x1d   :  { %1095 = vmatpush1.bf16.msra.mxu1 %v3490_v8 }
  0x1e   :  { %310 = vmatpush1.bf16.msra.mxu0 %v3448_v45  ;;  %1096 = vmatprep.subr.bf16.mxu1 %v3491_v10 }
  0x1f   :  { %311 = vmatprep.subr.bf16.mxu0 %v3783_v1 }
  0x21   :  { %1097 = vmatpush1.bf16.msra.mxu1 %v3496_v15 }
  0x22   :  { %312 = vmatpush1.bf16.msra.mxu0 %v3449_v52  ;;  %1098 = vmatprep.subr.bf16.mxu1 %v3497_v37 }
  0x23   :  { %313 = vmatprep.subr.bf16.mxu0 %v3783_v1 }
  0x25   :  { %1099 = vmatpush1.bf16.msra.mxu1 %v3502_v40 }
  0x26   :  { %314 = vmatpush1.bf16.msra.mxu0 %v3450_v59  ;;  %1125 = vmatprep.subr.bf16.mxu1 %v3505_v42 }
  0x27   :  { %315 = vmatprep.subr.bf16.mxu0 %v3783_v1 }
  0x2a   :  { %316 = vmatpush1.bf16.msra.mxu0 %v3451_v6 }
  0x2b   :  { %317 = vmatprep.subr.bf16.mxu0 %v3783_v1 }
  0x2e   :  { %318 = vmatpush1.bf16.msra.mxu0 %v3452_v13 }
  0x2f   :  { %319 = vmatprep.subr.bf16.mxu0 %v3783_v1 }
  0x32   :  { %320 = vmatpush1.bf16.msra.mxu0 %v3453_v18 }
  0x33   :  { %321 = vmatprep.subr.bf16.mxu0 %v3783_v1 }
  0x36   :  { %322 = vmatpush1.bf16.msra.mxu0 %v3454_v20 }
  0x37   :  { %1166 = vmatprep.subr.bf16.mxu0 %v3459_v21 }
  0x39   :  { %328 = vmatmul.mubr.bf16.vlgmr.msra.gmra.mrb[0].mxu0 %v172_v24 }
  0x3a   :  { %1167 = vmatpush1.bf16.msra.mxu0 %v3457_v23  ;;  %1198 = vmatprep.mubr.bf16.mxu0 %v3783_v1 }
  0x3b   :  { %1168 = vmatprep.subr.bf16.mxu0 %v3465_v25 }
  0x3e   :  { %1169 = vmatpush1.bf16.msra.mxu0 %v3463_v26 }
  0x3f   :  { %1170 = vmatprep.subr.bf16.mxu0 %v3471_v27 }
  0x42   :  { %1171 = vmatpush1.bf16.msra.mxu0 %v3469_v28 }
  0x43   :  { %1172 = vmatprep.subr.bf16.mxu0 %v3477_v29 }
  0x46   :  { %1173 = vmatpush1.bf16.msra.mxu0 %v3475_v30 }
  0x47   :  { %1174 = vmatprep.subr.bf16.mxu0 %v3483_v31 }
  0x4a   :  { %1175 = vmatpush1.bf16.msra.mxu0 %v3481_v32 }
  0x4b   :  { %1176 = vmatprep.subr.bf16.mxu0 %v3489_v33 }
  0x4e   :  { %1177 = vmatpush1.bf16.msra.mxu0 %v3487_v34 }
  0x4f   :  { %1178 = vmatprep.subr.bf16.mxu0 %v3495_v35 }
  0x52   :  { %1179 = vmatpush1.bf16.msra.mxu0 %v3493_v36 }
  0x53   :  { %1180 = vmatprep.subr.bf16.mxu0 %v3501_v38 }
  0x56   :  { %1181 = vmatpush1.bf16.msra.mxu0 %v3499_v39 }
  0x57   :  { %1248 = vmatprep.subr.bf16.mxu0 %v3508_v43 }
  0x58   :  { %12 = vsyncpa [#allocation3], 0  ;;  %v2941_v44 = vld [vmem:[%s4878_s6 + $0x1] ss:$0 sm:$0xff]  ;;  %v3511_v54 = vld [vmem:[%s4875_s3 + $0x7c] ss:$56 sps:$4 sm:$0xff]  }
  0x59   :  { %v3503_v51 = vld [vmem:[%s4875_s3 + $0x8] ss:$56 sps:$4 sm:$0xff]   ;;  %v3514_v55 = vld [vmem:[%s4875_s3 + $0x94] ss:$56 sps:$4 sm:$0xff]   ;;  %v3509_v56 = vld [vmem:[%s4875_s3 + $0x78] ss:$56 sps:$4 sm:$0xff]  }
  0x5a   :  { %v3506_v52 = vld [vmem:[%s4875_s3 + $0x20] ss:$56 sps:$4 sm:$0xff]   ;;  %v3512_v57 = vld [vmem:[%s4875_s3 + $0x90] ss:$56 sps:$4 sm:$0xff]   ;;  %v3517_v58 = vld [vmem:[%s4875_s3 + $0xec] ss:$56 sps:$4 sm:$0xff]  }
  0x5b   :  { %v3520_v59 = vld [vmem:[%s4875_s3 + $0x104] ss:$56 sps:$4 sm:$0xff]   ;;  %v3515_v60 = vld [vmem:[%s4875_s3 + $0xe8] ss:$56 sps:$4 sm:$0xff]   ;;  %v3526_v63 = vld [vmem:[%s4875_s3 + $0x174] ss:$56 sps:$4 sm:$0xff]  }
  0x5c   :  { %v3518_v61 = vld [vmem:[%s4875_s3 + $0x100] ss:$56 sps:$4 sm:$0xff]   ;;  %v3523_v62 = vld [vmem:[%s4875_s3 + $0x15c] ss:$56 sps:$4 sm:$0xff]   ;;  %v3524_v2 = vld [vmem:[%s4875_s3 + $0x170] ss:$56 sps:$4 sm:$0xff]  }
  0x5d   :  { %v3521_v0 = vld [vmem:[%s4875_s3 + $0x158] ss:$56 sps:$4 sm:$0xff]   ;;  %v3529_v3 = vld [vmem:[%s4875_s3 + $0x1cc] ss:$56 sps:$4 sm:$0xff]   ;;  %v3527_v6 = vld [vmem:[%s4875_s3 + $0x1c8] ss:$56 sps:$4 sm:$0xff]  }
  0x5e   :  { %v3532_v4 = vld [vmem:[%s4875_s3 + $0x1e4] ss:$56 sps:$4 sm:$0xff]   ;;  %v3530_v8 = vld [vmem:[%s4875_s3 + $0x1e0] ss:$56 sps:$4 sm:$0xff]   ;;  %v3538_v10 = vld [vmem:[%s4875_s3 + $0x254] ss:$56 sps:$4 sm:$0xff]  }
  0x5f   :  { %v3535_v9 = vld [vmem:[%s4875_s3 + $0x23c] ss:$56 sps:$4 sm:$0xff]   ;;  %v3533_v11 = vld [vmem:[%s4875_s3 + $0x238] ss:$56 sps:$4 sm:$0xff]   ;;  %v3541_v13 = vld [vmem:[%s4875_s3 + $0x2ac] ss:$56 sps:$4 sm:$0xff]  }
  0x60   :  { %v3536_v12 = vld [vmem:[%s4875_s3 + $0x250] ss:$56 sps:$4 sm:$0xff]   ;;  %v3544_v14 = vld [vmem:[%s4875_s3 + $0x2c4] ss:$56 sps:$4 sm:$0xff]   ;;  %v3542_v16 = vld [vmem:[%s4875_s3 + $0x2c0] ss:$56 sps:$4 sm:$0xff]  }
  0x61   :  { %v3539_v15 = vld [vmem:[%s4875_s3 + $0x2a8] ss:$56 sps:$4 sm:$0xff]   ;;  %v3547_v17 = vld [vmem:[%s4875_s3 + $0x31c] ss:$56 sps:$4 sm:$0xff]   ;;  %v3545_v19 = vld [vmem:[%s4875_s3 + $0x318] ss:$56 sps:$4 sm:$0xff]  }
  0x62   :  { %v3550_v18 = vld [vmem:[%s4875_s3 + $0x334] ss:$56 sps:$4 sm:$0xff]   ;;  %v3548_v20 = vld [vmem:[%s4875_s3 + $0x330] ss:$56 sps:$4 sm:$0xff]   ;;  %v3562_v26 = vld [vmem:[%s4875_s3 + $0xa4] ss:$56 sps:$4 sm:$0xff]  }
  0x63   :  { %v3553_v21 = vld [vmem:[%s4875_s3 + $0x1c] ss:$56 sps:$4 sm:$0xff]   ;;  %v3551_v23 = vld [vmem:[%s4875_s3 + $0x18] ss:$56 sps:$4 sm:$0xff]   ;;  %v3559_v25 = vld [vmem:[%s4875_s3 + $0x8c] ss:$56 sps:$4 sm:$0xff]  }
  0x64   :  { %v3556_v22 = vld [vmem:[%s4875_s3 + $0x34] ss:$56 sps:$4 sm:$0xff]   ;;  %v3554_v24 = vld [vmem:[%s4875_s3 + $0x30] ss:$56 sps:$4 sm:$0xff]   ;;  %v3560_v28 = vld [vmem:[%s4875_s3 + $0xa0] ss:$56 sps:$4 sm:$0xff]  }
  0x65   :  { %v3557_v27 = vld [vmem:[%s4875_s3 + $0x88] ss:$56 sps:$4 sm:$0xff]   ;;  %v3565_v29 = vld [vmem:[%s4875_s3 + $0xfc] ss:$56 sps:$4 sm:$0xff]   ;;  %v3563_v31 = vld [vmem:[%s4875_s3 + $0xf8] ss:$56 sps:$4 sm:$0xff]  }
  0x66   :  { %v3568_v30 = vld [vmem:[%s4875_s3 + $0x114] ss:$56 sps:$4 sm:$0xff]   ;;  %v3566_v32 = vld [vmem:[%s4875_s3 + $0x110] ss:$56 sps:$4 sm:$0xff]   ;;  %v3574_v34 = vld [vmem:[%s4875_s3 + $0x184] ss:$56 sps:$4 sm:$0xff]  }
  0x67   :  { %v3571_v33 = vld [vmem:[%s4875_s3 + $0x16c] ss:$56 sps:$4 sm:$0xff]   ;;  %v3569_v35 = vld [vmem:[%s4875_s3 + $0x168] ss:$56 sps:$4 sm:$0xff]   ;;  %v3577_v37 = vld [vmem:[%s4875_s3 + $0x1dc] ss:$56 sps:$4 sm:$0xff]  }
  0x68   :  { %v3572_v36 = vld [vmem:[%s4875_s3 + $0x180] ss:$56 sps:$4 sm:$0xff]   ;;  %v3580_v38 = vld [vmem:[%s4875_s3 + $0x1f4] ss:$56 sps:$4 sm:$0xff]   ;;  %v3578_v40 = vld [vmem:[%s4875_s3 + $0x1f0] ss:$56 sps:$4 sm:$0xff]  }
  0x69   :  { %v3575_v39 = vld [vmem:[%s4875_s3 + $0x1d8] ss:$56 sps:$4 sm:$0xff]   ;;  %v3583_v42 = vld [vmem:[%s4875_s3 + $0x24c] ss:$56 sps:$4 sm:$0xff]   ;;  %vm3785_vm5 = vmmov 0   ;;  %s3786_s22 = smov 64  }
  0x6a   :  { %v3586_v43 = vld [vmem:[%s4875_s3 + $0x264] ss:$56 sps:$4 sm:$0xff]   ;;  %vm2585_vm6 = vcmask 523264   ;;  %vm2905_vm7 = vcmask 74752  }
 0x10c   :  { %v329_v45 = vpop.f32.mrb[0].mxu0 }
 0x10d   :  { %v330_v46 = vadd.f32 %v2941_v44, %v329_v45  ;;  %v331_v47 = vpop.f32.mrb[1].mxu0  ;;  %v3581_v44 = vld [vmem:[%s4875_s3 + $0x248] ss:$56 sps:$4 sm:$0xff]  }
 0x10e   :  { %v332_v48 = vpop.f32.mrb[2].mxu0  ;;  %v3584_v45 = vld [vmem:[%s4875_s3 + $0x260] ss:$56 sps:$4 sm:$0xff]   ;;  %v3592_v47 = vld [vmem:[%s4875_s3 + $0x2d4] ss:$56 sps:$4 sm:$0xff]  }
 0x10f   :  { %v335_v49 = vmax.f32 %v330_v46, 0.0  ;;  %v333_v50 = vpop.f32.mrb[3].mxu0  ;;  %v3589_v46 = vld [vmem:[%s4875_s3 + $0x2bc] ss:$56 sps:$4 sm:$0xff]   ;;  %v3587_v48 = vld [vmem:[%s4875_s3 + $0x2b8] ss:$56 sps:$4 sm:$0xff]  }
 0x110   :  { %v3595_v50 = vld [vmem:[%s4875_s3 + $0x32c] ss:$56 sps:$4 sm:$0xff]  }
 0x111   :  { %v4118_v53 = vpack.c.bf16 %v335_v49, %v335_v49  ;;  %v3590_v49 = vld [vmem:[%s4875_s3 + $0x2d0] ss:$56 sps:$4 sm:$0xff]  }
 0x113   :  { %1117 = vmatmul.mubr.bf16.vlgmr.msra.gmra.mrb[0].mxu1 %v4118_v53  ;;  %1199 = vmatmul.mubr.bf16.vlgmr.msra.gmra.mrb[4].mxu0 %v4118_v53 }
 0x114   :  { %1126 = vmatpush1.bf16.msra.mxu1 %v3503_v51  ;;  %1249 = vmatpush1.bf16.msra.mxu0 %v3506_v52  ;;  %v3598_v51 = vld [vmem:[%s4875_s3 + $0x344] ss:$56 sps:$4 sm:$0xff]   ;;  %v3593_v52 = vld [vmem:[%s4875_s3 + $0x328] ss:$56 sps:$4 sm:$0xff]  }
 0x115   :  { %1127 = vmatprep.subr.bf16.mxu1 %v3511_v54  ;;  %1250 = vmatprep.subr.bf16.mxu0 %v3514_v55  ;;  %v3596_v54 = vld [vmem:[%s4875_s3 + $0x340] ss:$56 sps:$4 sm:$0xff]   ;;  %v3601_v55 = vld [vmem:[%s4875_s3 + $0x2c] ss:$56 sps:$4 sm:$0xff]  }
 0x116   :  { %1157 = vmatprep.mubr.bf16.mxu1 %v3783_v1  ;;  %1280 = vmatprep.mubr.bf16.mxu0 %v3783_v1 }
 0x118   :  { %1128 = vmatpush1.bf16.msra.mxu1 %v3509_v56  ;;  %1251 = vmatpush1.bf16.msra.mxu0 %v3512_v57  ;;  %v3599_v56 = vld [vmem:[%s4875_s3 + $0x28] ss:$56 sps:$4 sm:$0xff]   ;;  %v3604_v57 = vld [vmem:[%s4875_s3 + $0x9c] ss:$56 sps:$4 sm:$0xff]  }
 0x119   :  { %1129 = vmatprep.subr.bf16.mxu1 %v3517_v58  ;;  %1252 = vmatprep.subr.bf16.mxu0 %v3520_v59  ;;  %v3602_v58 = vld [vmem:[%s4875_s3 + $0x98] ss:$56 sps:$4 sm:$0xff]   ;;  %v3607_v59 = vld [vmem:[%s4875_s3 + $0x10c] ss:$56 sps:$4 sm:$0xff]  }
 0x11c   :  { %1130 = vmatpush1.bf16.msra.mxu1 %v3515_v60  ;;  %1253 = vmatpush1.bf16.msra.mxu0 %v3518_v61  ;;  %v3605_v60 = vld [vmem:[%s4875_s3 + $0x108] ss:$56 sps:$4 sm:$0xff]   ;;  %v3610_v61 = vld [vmem:[%s4875_s3 + $0x17c] ss:$56 sps:$4 sm:$0xff]  }
 0x11d   :  { %1131 = vmatprep.subr.bf16.mxu1 %v3523_v62  ;;  %1254 = vmatprep.subr.bf16.mxu0 %v3526_v63  ;;  %v3613_v62 = vld [vmem:[%s4875_s3 + $0x1ec] ss:$56 sps:$4 sm:$0xff]   ;;  %v3611_v63 = vld [vmem:[%s4875_s3 + $0x1e8] ss:$56 sps:$4 sm:$0xff]  }
 0x120   :  { %1132 = vmatpush1.bf16.msra.mxu1 %v3521_v0  ;;  %1255 = vmatpush1.bf16.msra.mxu0 %v3524_v2  ;;  %v3616_v0 = vld [vmem:[%s4875_s3 + $0x25c] ss:$56 sps:$4 sm:$0xff]   ;;  %v3614_v2 = vld [vmem:[%s4875_s3 + $0x258] ss:$56 sps:$4 sm:$0xff]  }
 0x121   :  { %1133 = vmatprep.subr.bf16.mxu1 %v3529_v3  ;;  %1256 = vmatprep.subr.bf16.mxu0 %v3532_v4  ;;  %v3619_v3 = vld [vmem:[%s4875_s3 + $0x2cc] ss:$56 sps:$4 sm:$0xff]   ;;  %v3617_v4 = vld [vmem:[%s4875_s3 + $0x2c8] ss:$56 sps:$4 sm:$0xff]  }
 0x124   :  { %1134 = vmatpush1.bf16.msra.mxu1 %v3527_v6  ;;  %1257 = vmatpush1.bf16.msra.mxu0 %v3530_v8  ;;  %v3622_v6 = vld [vmem:[%s4875_s3 + $0x33c] ss:$56 sps:$4 sm:$0xff]   ;;  %v3620_v8 = vld [vmem:[%s4875_s3 + $0x338] ss:$56 sps:$4 sm:$0xff]  }
 0x125   :  { %1135 = vmatprep.subr.bf16.mxu1 %v3535_v9  ;;  %1258 = vmatprep.subr.bf16.mxu0 %v3538_v10  ;;  %v3623_v9 = vld [vmem:[%s4876_s4 + $0x40] sm:$0xff]  }
 0x126   :  { %v3639_v10 = vld [vmem:[%s4876_s4 + $0xc0] sm:$0xff]  }
 0x128   :  { %1136 = vmatpush1.bf16.msra.mxu1 %v3533_v11  ;;  %1259 = vmatpush1.bf16.msra.mxu0 %v3536_v12  ;;  %v3641_v11 = vld [vmem:[%s4876_s4 + $0x80] sm:$0xff]  }
 0x129   :  { %1137 = vmatprep.subr.bf16.mxu1 %v3541_v13  ;;  %1260 = vmatprep.subr.bf16.mxu0 %v3544_v14  ;;  %v3624_v12 = vld [vmem:[%s4876_s4] sm:$0xff]   ;;  %v3643_v13 = vld [vmem:[%s4876_s4 + $0xc8] sm:$0xff]  }
 0x12a   :  { %v3625_v14 = vld [vmem:[%s4876_s4 + $0x48] sm:$0xff]  }
 0x12c   :  { %1138 = vmatpush1.bf16.msra.mxu1 %v3539_v15  ;;  %1261 = vmatpush1.bf16.msra.mxu0 %v3542_v16  ;;  %v3645_v15 = vld [vmem:[%s4876_s4 + $0x88] sm:$0xff]  }
 0x12d   :  { %1139 = vmatprep.subr.bf16.mxu1 %v3547_v17  ;;  %1262 = vmatprep.subr.bf16.mxu0 %v3550_v18  ;;  %v3626_v16 = vld [vmem:[%s4876_s4 + $0x8] sm:$0xff]   ;;  %v3647_v17 = vld [vmem:[%s4876_s4 + $0xd0] sm:$0xff]  }
 0x12e   :  { %v3627_v18 = vld [vmem:[%s4876_s4 + $0x50] sm:$0xff]  }
 0x130   :  { %1140 = vmatpush1.bf16.msra.mxu1 %v3545_v19  ;;  %1263 = vmatpush1.bf16.msra.mxu0 %v3548_v20  ;;  %v3649_v19 = vld [vmem:[%s4876_s4 + $0x90] sm:$0xff]   ;;  %v3651_v20 = vld [vmem:[%s4876_s4 + $0xd8] sm:$0xff]  }
 0x131   :  { %1207 = vmatprep.subr.bf16.mxu1 %v3553_v21  ;;  %1330 = vmatprep.subr.bf16.mxu0 %v3556_v22  ;;  %v3629_v21 = vld [vmem:[%s4876_s4 + $0x58] sm:$0xff]  }
 0x132   :  { %v3653_v22 = vld [vmem:[%s4876_s4 + $0x98] sm:$0xff]  }
 0x133   :  { %1158 = vmatmul.mubr.bf16.vlgmr.msra.gmra.mrb[4].mxu1 %v4118_v53  ;;  %1281 = vmatmul.mubr.bf16.vlgmr.msra.gmra.mrb[8].mxu0 %v4118_v53 }
 0x134   :  { %1208 = vmatpush1.bf16.msra.mxu1 %v3551_v23  ;;  %1331 = vmatpush1.bf16.msra.mxu0 %v3554_v24  ;;  %v3630_v23 = vld [vmem:[%s4876_s4 + $0x18] sm:$0xff]   ;;  %v3655_v24 = vld [vmem:[%s4876_s4 + $0xe0] sm:$0xff]  }
 0x135   :  { %1209 = vmatprep.subr.bf16.mxu1 %v3559_v25  ;;  %1332 = vmatprep.subr.bf16.mxu0 %v3562_v26  ;;  %v3631_v25 = vld [vmem:[%s4876_s4 + $0x60] sm:$0xff]  }
 0x136   :  { %1239 = vmatprep.mubr.bf16.mxu1 %v3783_v1  ;;  %1362 = vmatprep.mubr.bf16.mxu0 %v3783_v1  ;;  %v3657_v26 = vld [vmem:[%s4876_s4 + $0xa0] sm:$0xff]  }
 0x138   :  { %1210 = vmatpush1.bf16.msra.mxu1 %v3557_v27  ;;  %1333 = vmatpush1.bf16.msra.mxu0 %v3560_v28  ;;  %v3632_v27 = vld [vmem:[%s4876_s4 + $0x20] sm:$0xff]   ;;  %v3659_v28 = vld [vmem:[%s4876_s4 + $0xe8] sm:$0xff]  }
 0x139   :  { %1211 = vmatprep.subr.bf16.mxu1 %v3565_v29  ;;  %1334 = vmatprep.subr.bf16.mxu0 %v3568_v30  ;;  %v3633_v29 = vld [vmem:[%s4876_s4 + $0x68] sm:$0xff]  }
 0x13a   :  { %v3661_v30 = vld [vmem:[%s4876_s4 + $0xa8] sm:$0xff]  }
 0x13c   :  { %1212 = vmatpush1.bf16.msra.mxu1 %v3563_v31  ;;  %1335 = vmatpush1.bf16.msra.mxu0 %v3566_v32  ;;  %v3634_v31 = vld [vmem:[%s4876_s4 + $0x28] sm:$0xff]   ;;  %v3635_v32 = vld [vmem:[%s4876_s4 + $0x70] sm:$0xff]  }
 0x13d   :  { %1213 = vmatprep.subr.bf16.mxu1 %v3571_v33  ;;  %1336 = vmatprep.subr.bf16.mxu0 %v3574_v34  ;;  %v3663_v33 = vld [vmem:[%s4876_s4 + $0xf0] sm:$0xff]  }
 0x13e   :  { %v3665_v34 = vld [vmem:[%s4876_s4 + $0xb0] sm:$0xff]  }
 0x140   :  { %1214 = vmatpush1.bf16.msra.mxu1 %v3569_v35  ;;  %1337 = vmatpush1.bf16.msra.mxu0 %v3572_v36  ;;  %v3636_v35 = vld [vmem:[%s4876_s4 + $0x30] sm:$0xff]   ;;  %v3637_v36 = vld [vmem:[%s4876_s4 + $0x78] sm:$0xff]  }
 0x141   :  { %1215 = vmatprep.subr.bf16.mxu1 %v3577_v37  ;;  %1338 = vmatprep.subr.bf16.mxu0 %v3580_v38  ;;  %v3667_v37 = vld [vmem:[%s4876_s4 + $0xf8] sm:$0xff]  }
 0x142   :  { %v3669_v38 = vld [vmem:[%s4876_s4 + $0xb8] sm:$0xff]  }
 0x144   :  { %1216 = vmatpush1.bf16.msra.mxu1 %v3575_v39  ;;  %1339 = vmatpush1.bf16.msra.mxu0 %v3578_v40  ;;  %v3638_v39 = vld [vmem:[%s4876_s4 + $0x38] sm:$0xff]   ;;  %v3640_v40 = vld [vmem:[%s4876_s4 + $0x140] sm:$0xff]  }
 0x145   :  { %1217 = vmatprep.subr.bf16.mxu1 %v3583_v42  ;;  %1340 = vmatprep.subr.bf16.mxu0 %v3586_v43  ;;  %v3671_v42 = vld [vmem:[%s4876_s4 + $0x1c0] sm:$0xff]  }
 0x146   :  { %v4465_v43 = vld [vmem:[%s4878_s6] ss:$2 sm:$0xff] }
 0x148   :  { %1218 = vmatpush1.bf16.msra.mxu1 %v3581_v44  ;;  %1341 = vmatpush1.bf16.msra.mxu0 %v3584_v45  ;;  %v476_v44 = vsub.s32 5, %v3841_v5  ;;  %v457_v45 = vrot.slane %v4465_v43, %v3952_v41 }
 0x149   :  { %1219 = vmatprep.subr.bf16.mxu1 %v3589_v46  ;;  %1342 = vmatprep.subr.bf16.mxu0 %v3592_v47  ;;  %v461_v46 = vrot.slane %v4465_v43, %v3848_v7 }
 0x14a   :  { %v477_v47 = vrot.slane %v4465_v43, %v476_v44 }
 0x14c   :  { %1220 = vmatpush1.bf16.msra.mxu1 %v3587_v48  ;;  %1343 = vmatpush1.bf16.msra.mxu0 %v3590_v49 }
 0x14d   :  { %1221 = vmatprep.subr.bf16.mxu1 %v3595_v50  ;;  %1344 = vmatprep.subr.bf16.mxu0 %v3598_v51 }
 0x150   :  { %1222 = vmatpush1.bf16.msra.mxu1 %v3593_v52  ;;  %1345 = vmatpush1.bf16.msra.mxu0 %v3596_v54 }
 0x151   :  { %1289 = vmatprep.subr.bf16.mxu1 %v3601_v55  ;;  %3229 = vmatprep.subr.bf16.mxu0 %v3639_v10  ;;  %v3654_v10 = vld [vmem:[%s4876_s4 + $0x118] sm:$0xff]  }
 0x153   :  { %1240 = vmatmul.mubr.bf16.vlgmr.msra.gmra.mrb[8].mxu1 %v4118_v53  ;;  %1363 = vmatmul.mubr.bf16.vlgmr.msra.gmra.mrb[12].mxu0 %v4118_v53 }
 0x154   :  { %1290 = vmatpush1.bf16.msra.mxu1 %v3599_v56  ;;  %1321 = vmatprep.mubr.bf16.mxu1 %v3783_v1  ;;  %v3608_v1 = vld [vmem:[%s4875_s3 + $0x178] ss:$56 sps:$4 sm:$0xff]  }
 0x155   :  { %1291 = vmatprep.subr.bf16.mxu1 %v3604_v57  ;;  %3230 = vmatpush3.bf16.msra.mxu0 %v3641_v11  ;;  %v3656_v11 = vld [vmem:[%s4876_s4 + $0x160] sm:$0xff]  }
 0x156   :  { %3231 = vmatprep.subr.bf16.mxu0 %v3643_v13  ;;  %v472_v13 = vsub.s32 4, %v3841_v5 }
 0x158   :  { %1292 = vmatpush1.bf16.msra.mxu1 %v3602_v58 }
 0x159   :  { %1293 = vmatprep.subr.bf16.mxu1 %v3607_v59  ;;  %3232 = vmatpush3.bf16.msra.mxu0 %v3645_v15  ;;  %v464_v15 = vsub.s32 2, %v3841_v5 }
 0x15a   :  { %3233 = vmatprep.subr.bf16.mxu0 %v3647_v17  ;;  %v468_v17 = vsub.s32 3, %v3841_v5 }
 0x15c   :  { %1294 = vmatpush1.bf16.msra.mxu1 %v3605_v60 }
 0x15d   :  { %1295 = vmatprep.subr.bf16.mxu1 %v3610_v61  ;;  %3234 = vmatpush3.bf16.msra.mxu0 %v3649_v19  ;;  %v4517_v19 = vld [vmem:[%s4878_s6 + $0x10] ss:$2 sm:$0x3f] }
 0x15e   :  { %3235 = vmatprep.subr.bf16.mxu0 %v3651_v20  ;;  %v465_v20 = vrot.slane %v4465_v43, %v464_v15 }
 0x160   :  { %1296 = vmatpush1.bf16.msra.mxu1 %v3608_v1 }
 0x161   :  { %1297 = vmatprep.subr.bf16.mxu1 %v3613_v62  ;;  %3236 = vmatpush3.bf16.msra.mxu0 %v3653_v22  ;;  %v493_v22 = vrot.slane %v4517_v19, %v3848_v7 }
 0x162   :  { %3237 = vmatprep.subr.bf16.mxu0 %v3655_v24 }
 0x164   :  { %1298 = vmatpush1.bf16.msra.mxu1 %v3611_v63  ;;  %v3642_v63 = vld [vmem:[%s4876_s4 + $0x100] sm:$0xff]  }
 0x165   :  { %1299 = vmatprep.subr.bf16.mxu1 %v3616_v0  ;;  %3238 = vmatpush3.bf16.msra.mxu0 %v3657_v26 }
 0x166   :  { %3239 = vmatprep.subr.bf16.mxu0 %v3659_v28 }
 0x168   :  { %1300 = vmatpush1.bf16.msra.mxu1 %v3614_v2  ;;  %v3644_v2 = vld [vmem:[%s4876_s4 + $0x148] sm:$0xff]  }
 0x169   :  { %1301 = vmatprep.subr.bf16.mxu1 %v3619_v3  ;;  %3240 = vmatpush3.bf16.msra.mxu0 %v3661_v30 }
 0x16a   :  { %3241 = vmatprep.subr.bf16.mxu0 %v3663_v33 }
 0x16c   :  { %1302 = vmatpush1.bf16.msra.mxu1 %v3617_v4  ;;  %v3646_v4 = vld [vmem:[%s4876_s4 + $0x108] sm:$0xff]  }
 0x16d   :  { %1303 = vmatprep.subr.bf16.mxu1 %v3622_v6  ;;  %3242 = vmatpush3.bf16.msra.mxu0 %v3665_v34  ;;  %v3648_v6 = vld [vmem:[%s4876_s4 + $0x150] sm:$0xff]   ;;  %v3670_v34 = vld [vmem:[%s4876_s4 + $0x138] sm:$0xff]  }
 0x16e   :  { %3243 = vmatprep.subr.bf16.mxu0 %v3667_v37 }
 0x170   :  { %1304 = vmatpush1.bf16.msra.mxu1 %v3620_v8  ;;  %v3650_v8 = vld [vmem:[%s4876_s4 + $0x110] sm:$0xff]  }
 0x171   :  { %3207 = vmatprep.subr.bf16.mxu1 %v3623_v9  ;;  %3244 = vmatpush3.bf16.msra.mxu0 %v3669_v38  ;;  %v3652_v9 = vld [vmem:[%s4876_s4 + $0x158] sm:$0xff]  }
 0x172   :  { %3273 = vmatprep.subr.bf16.mxu0 %v3671_v42 }
 0x173   :  { %1322 = vmatmul.mubr.bf16.vlgmr.msra.gmra.mrb[12].mxu1 %v4118_v53  ;;  %v3628_v53 = vld [vmem:[%s4876_s4 + $0x10] sm:$0xff]  }
 0x174   :  { %3208 = vmatpush3.bf16.msra.mxu1 %v3624_v12  ;;  %v3658_v12 = vld [vmem:[%s4876_s4 + $0x120] sm:$0xff]  }
 0x175   :  { %3209 = vmatprep.subr.bf16.mxu1 %v3625_v14  ;;  %v3660_v14 = vld [vmem:[%s4876_s4 + $0x168] sm:$0xff]  }
 0x178   :  { %3210 = vmatpush3.bf16.msra.mxu1 %v3626_v16  ;;  %v3662_v16 = vld [vmem:[%s4876_s4 + $0x128] sm:$0xff]  }
 0x179   :  { %3211 = vmatprep.subr.bf16.mxu1 %v3627_v18  ;;  %v473_v18 = vrot.slane %v4465_v43, %v472_v13 }
 0x17c   :  { %3212 = vmatpush3.bf16.msra.mxu1 %v3628_v53  ;;  %v3664_v53 = vld [vmem:[%s4876_s4 + $0x170] sm:$0xff]  }
 0x17d   :  { %3213 = vmatprep.subr.bf16.mxu1 %v3629_v21  ;;  %v469_v21 = vrot.slane %v4465_v43, %v468_v17 }
 0x180   :  { %3214 = vmatpush3.bf16.msra.mxu1 %v3630_v23  ;;  %v3666_v23 = vld [vmem:[%s4876_s4 + $0x130] sm:$0xff]  }
 0x181   :  { %3215 = vmatprep.subr.bf16.mxu1 %v3631_v25  ;;  %v3668_v25 = vld [vmem:[%s4876_s4 + $0x178] sm:$0xff]  }
 0x184   :  { %3216 = vmatpush3.bf16.msra.mxu1 %v3632_v27 }
 0x185   :  { %3217 = vmatprep.subr.bf16.mxu1 %v3633_v29 }
 0x188   :  { %3218 = vmatpush3.bf16.msra.mxu1 %v3634_v31 }
 0x189   :  { %3219 = vmatprep.subr.bf16.mxu1 %v3635_v32 }
 0x18c   :  { %3220 = vmatpush3.bf16.msra.mxu1 %v3636_v35 }
 0x18d   :  { %3221 = vmatprep.subr.bf16.mxu1 %v3637_v36 }
 0x190   :  { %3222 = vmatpush3.bf16.msra.mxu1 %v3638_v39  ;;  %v3672_v39 = vld [vmem:[%s4876_s4 + $0x240] sm:$0xff]  }
 0x191   :  { %3251 = vmatprep.subr.bf16.mxu1 %v3640_v40 }
 0x1e6   :  { %v1118_v48 = vpop.f32.mrb[0].mxu1  ;;  %v1200_v49 = vpop.f32.mrb[4].mxu0 }
 0x1e7   :  { %v1119_v50 = vadd.f32 %v1118_v48, %v457_v45  ;;  %v1120_v51 = vpop.f32.mrb[1].mxu1  ;;  %v1202_v52 = vpop.f32.mrb[5].mxu0  ;;  %v1201_v24 = vadd.f32 %v1200_v49, %v473_v18 }
 0x1e8   :  { %v1121_v54 = vadd.f32 %v1120_v51, %v461_v46  ;;  %v1203_v55 = vadd.f32 %v1202_v52, %v477_v47  ;;  %v1122_v56 = vpop.f32.mrb[2].mxu1  ;;  %v1204_v57 = vpop.f32.mrb[6].mxu0  ;;  %v3673_v46 = vld [vmem:[%s4876_s4 + $0x180] sm:$0xff]   ;;  %v3676_v51 = vld [vmem:[%s4876_s4 + $0x248] sm:$0xff]  }
 0x1e9   :  { %v1371_v58 = vmax.f32 %v1119_v50, 0.0  ;;  %v1123_v59 = vpop.f32.mrb[3].mxu1  ;;  %v1205_v60 = vpop.f32.mrb[7].mxu0  ;;  %v1375_v35 = vmax.f32 %v1201_v24, 0.0  ;;  %v3674_v47 = vld [vmem:[%s4876_s4 + $0x200] sm:$0xff]   ;;  %v3675_v50 = vld [vmem:[%s4876_s4 + $0x1c8] sm:$0xff]  }
 0x1ea   :  { %v1372_v61 = vmax.f32 %v1121_v54, 0.0  ;;  %v1376_v1 = vmax.f32 %v1203_v55, 0.0  ;;  %v3677_v54 = vld [vmem:[%s4876_s4 + $0x188] sm:$0xff]   ;;  %v3679_v56 = vld [vmem:[%s4876_s4 + $0x1d0] sm:$0xff]   ;;  %v3683_v60 = vld [vmem:[%s4876_s4 + $0x1d8] sm:$0xff]  }
 0x1eb   :  { %v1385_v0 = vpack.c.bf16 %v1371_v58, %v1371_v58  ;;  %v1389_v48 = vpack.c.bf16 %v1375_v35, %v1375_v35  ;;  %v3678_v55 = vld [vmem:[%s4876_s4 + $0x208] sm:$0xff]   ;;  %v3680_v57 = vld [vmem:[%s4876_s4 + $0x250] sm:$0xff]  }
 0x1ec   :  { %v1386_v62 = vpack.c.bf16 %v1372_v61, %v1372_v61  ;;  %v1390_v3 = vpack.c.bf16 %v1376_v1, %v1376_v1  ;;  %v3681_v58 = vld [vmem:[%s4876_s4 + $0x190] sm:$0xff]   ;;  %v3684_v61 = vld [vmem:[%s4876_s4 + $0x258] sm:$0xff]  }
 0x1ed   :  { %v3682_v59 = vld [vmem:[%s4876_s4 + $0x210] sm:$0xff]   ;;  %v3685_v1 = vld [vmem:[%s4876_s4 + $0x198] sm:$0xff]  }
 0x1ee   :  { %2332 = vmatprep.mubr.bf16.mxu1 %v1386_v62  ;;  %v3686_v62 = vld [vmem:[%s4876_s4 + $0x218] sm:$0xff]  }
 0x1ef   :  { %2333 = vmatmul.mubr.bf16.vlgmr.msra.gmra.mrb[16].mxu1 %v1385_v0  ;;  %v3688_v0 = vld [vmem:[%s4876_s4 + $0x260] sm:$0xff]  }
 0x1f0   :  { %3252 = vmatpush3.bf16.msra.mxu1 %v3642_v63  ;;  %2412 = vmatprep.mubr.bf16.mxu1 %v1390_v3  ;;  %v3687_v63 = vld [vmem:[%s4876_s4 + $0x1e0] sm:$0xff]  }
 0x1f1   :  { %3253 = vmatprep.subr.bf16.mxu1 %v3644_v2  ;;  %v3689_v2 = vld [vmem:[%s4876_s4 + $0x1a0] sm:$0xff]  }
 0x1f2   :  { %v3690_v3 = vld [vmem:[%s4876_s4 + $0x220] sm:$0xff]  }
 0x1f4   :  { %3254 = vmatpush3.bf16.msra.mxu1 %v3646_v4  ;;  %v3691_v4 = vld [vmem:[%s4876_s4 + $0x1e8] sm:$0xff]  }
 0x1f5   :  { %3255 = vmatprep.subr.bf16.mxu1 %v3648_v6  ;;  %v3692_v6 = vld [vmem:[%s4876_s4 + $0x268] sm:$0xff]  }
 0x1f8   :  { %3256 = vmatpush3.bf16.msra.mxu1 %v3650_v8  ;;  %v480_v8 = vsub.s32 6, %v3841_v5 }
 0x1f9   :  { %3257 = vmatprep.subr.bf16.mxu1 %v3652_v9  ;;  %v3693_v9 = vld [vmem:[%s4876_s4 + $0x1a8] sm:$0xff]  }
 0x1fa   :  { %v481_v18 = vrot.slane %v4465_v43, %v480_v8  ;;  %v3725_v8 = vld [vmem:[%s4876_s4 + $0x2a8] sm:$0xff]  }
 0x1fc   :  { %3258 = vmatpush3.bf16.msra.mxu1 %v3654_v10  ;;  %v3694_v10 = vld [vmem:[%s4876_s4 + $0x228] sm:$0xff]  }
 0x1fd   :  { %3259 = vmatprep.subr.bf16.mxu1 %v3656_v11  ;;  %v484_v11 = vsub.s32 7, %v3841_v5  ;;  %v3732_v5 = vld [vmem:[%s4876_s4 + $0x378] sm:$0xff]  }
 0x200   :  { %3260 = vmatpush3.bf16.msra.mxu1 %v3658_v12  ;;  %v489_v12 = vrot.slane %v4517_v19, %v3952_v41  ;;  %v485_v41 = vrot.slane %v4465_v43, %v484_v11  ;;  %v3699_v43 = vld [vmem:[%s4876_s4 + $0x1f8] sm:$0xff]   ;;  %v3728_v11 = vld [vmem:[%s4876_s4 + $0x370] sm:$0xff]  }
 0x201   :  { %3261 = vmatprep.subr.bf16.mxu1 %v3660_v14  ;;  %v3695_v14 = vld [vmem:[%s4876_s4 + $0x1f0] sm:$0xff]  }
 0x204   :  { %3262 = vmatpush3.bf16.msra.mxu1 %v3662_v16  ;;  %v3696_v16 = vld [vmem:[%s4876_s4 + $0x270] sm:$0xff]  }
 0x205   :  { %3263 = vmatprep.subr.bf16.mxu1 %v3664_v53  ;;  %v505_v53 = vrot.slane %v4517_v19, %v472_v13 }
 0x206   :  { %v1159_v26 = vpop.f32.mrb[4].mxu1  ;;  %v4536_v27 = vpop.f32.mrb[8].mxu0 }
 0x207   :  { %v1160_v28 = vadd.f32 %v1159_v26, %v465_v20  ;;  %v1161_v29 = vpop.f32.mrb[5].mxu1  ;;  %v1284_v30 = vpop.f32.mrb[9].mxu0  ;;  %v509_v20 = vrot.slane %v4517_v19, %v476_v44  ;;  %v3700_v44 = vld [vmem:[%s4876_s4 + $0x278] sm:$0xff]  }
 0x208   :  { %v1162_v31 = vadd.f32 %v1161_v29, %v469_v21  ;;  %v1285_v32 = vadd.f32 %v1284_v30, %v493_v22  ;;  %v1163_v33 = vpop.f32.mrb[6].mxu1  ;;  %v1286_v7 = vpop.f32.mrb[10].mxu0  ;;  %3264 = vmatpush3.bf16.msra.mxu1 %v3666_v23  ;;  %v3697_v21 = vld [vmem:[%s4876_s4 + $0x1b0] sm:$0xff]   ;;  %v1283_v23 = vadd.f32 %v4536_v27, %v489_v12  ;;  %v497_v12 = vrot.slane %v4517_v19, %v464_v15  ;;  %v3731_v15 = vld [vmem:[%s4876_s4 + $0x2f8] sm:$0xff]  }
 0x209   :  { %v1373_v36 = vmax.f32 %v1160_v28, 0.0  ;;  %v1164_v37 = vpop.f32.mrb[7].mxu1  ;;  %v1287_v38 = vpop.f32.mrb[11].mxu0  ;;  %3265 = vmatprep.subr.bf16.mxu1 %v3668_v25  ;;  %v3698_v22 = vld [vmem:[%s4876_s4 + $0x230] sm:$0xff]   ;;  %v3701_v33 = vld [vmem:[%s4876_s4 + $0x1b8] sm:$0xff]  }
 0x20a   :  { %v1374_v40 = vmax.f32 %v1162_v31, 0.0  ;;  %v1380_v42 = vmax.f32 %v1285_v32, 0.0  ;;  %v3702_v7 = vld [vmem:[%s4876_s4 + $0x238] sm:$0xff]   ;;  %v3703_v38 = vld [vmem:[%s4876_s4 + $0x2c0] sm:$0xff]  }
 0x20b   :  { %v1387_v49 = vpack.c.bf16 %v1373_v36, %v1373_v36 }
 0x20c   :  { %v1388_v45 = vpack.c.bf16 %v1374_v40, %v1374_v40  ;;  %3266 = vmatpush3.bf16.msra.mxu1 %v3670_v34  ;;  %v1394_v52 = vpack.c.bf16 %v1380_v42, %v1380_v42  ;;  %v1379_v34 = vmax.f32 %v1283_v23, 0.0 }
 0x20d   :  { %3295 = vmatprep.subr.bf16.mxu1 %v3672_v39  ;;  %v3704_v39 = vld [vmem:[%s4876_s4 + $0x340] sm:$0xff]  }
 0x20e   :  { %2372 = vmatprep.mubr.bf16.mxu0 %v1388_v45 }
 0x20f   :  { %2373 = vmatmul.mubr.bf16.vlgmr.msra.gmra.mrb[16].mxu0 %v1387_v49  ;;  %2413 = vmatmul.mubr.bf16.vlgmr.msra.gmra.mrb[20].mxu1 %v1389_v48  ;;  %v1393_v48 = vpack.c.bf16 %v1379_v34, %v1379_v34  ;;  %v3741_v34 = vld [vmem:[%s4877_s5 + $0x90] ss:$12 sps:$4 sm:$0xff]  }
 0x210   :  { %3274 = vmatpush3.bf16.msra.mxu0 %v3673_v46  ;;  %3296 = vmatpush3.bf16.msra.mxu1 %v3674_v47  ;;  %v3705_v46 = vld [vmem:[%s4876_s4 + $0x280] sm:$0xff]  }
 0x211   :  { %2492 = vmatprep.mubr.bf16.mxu1 %v1394_v52  ;;  %3275 = vmatprep.subr.bf16.mxu0 %v3675_v50  ;;  %v3706_v47 = vld [vmem:[%s4876_s4 + $0x300] sm:$0xff]   ;;  %v3707_v50 = vld [vmem:[%s4876_s4 + $0x2c8] sm:$0xff]  }
 0x212   :  { %3297 = vmatprep.subr.bf16.mxu1 %v3676_v51  ;;  %v3708_v51 = vld [vmem:[%s4876_s4 + $0x348] sm:$0xff]  }
 0x214   :  { %3276 = vmatpush3.bf16.msra.mxu0 %v3677_v54  ;;  %3298 = vmatpush3.bf16.msra.mxu1 %v3678_v55  ;;  %v3709_v54 = vld [vmem:[%s4876_s4 + $0x288] sm:$0xff]  }
 0x215   :  { %3277 = vmatprep.subr.bf16.mxu0 %v3679_v56  ;;  %3299 = vmatprep.subr.bf16.mxu1 %v3680_v57  ;;  %v3710_v55 = vld [vmem:[%s4876_s4 + $0x308] sm:$0xff]   ;;  %v3711_v56 = vld [vmem:[%s4876_s4 + $0x2d0] sm:$0xff]  }
 0x216   :  { %v3712_v57 = vld [vmem:[%s4876_s4 + $0x350] sm:$0xff]  }
 0x218   :  { %3278 = vmatpush3.bf16.msra.mxu0 %v3681_v58  ;;  %3300 = vmatpush3.bf16.msra.mxu1 %v3682_v59  ;;  %v3713_v58 = vld [vmem:[%s4876_s4 + $0x290] sm:$0xff]  }
 0x219   :  { %3279 = vmatprep.subr.bf16.mxu0 %v3683_v60  ;;  %3301 = vmatprep.subr.bf16.mxu1 %v3684_v61  ;;  %v3714_v59 = vld [vmem:[%s4876_s4 + $0x310] sm:$0xff]   ;;  %v3715_v60 = vld [vmem:[%s4876_s4 + $0x2d8] sm:$0xff]  }
 0x21a   :  { %v3716_v61 = vld [vmem:[%s4876_s4 + $0x358] sm:$0xff]  }
 0x21c   :  { %3280 = vmatpush3.bf16.msra.mxu0 %v3685_v1  ;;  %3302 = vmatpush3.bf16.msra.mxu1 %v3686_v62  ;;  %v3717_v1 = vld [vmem:[%s4876_s4 + $0x298] sm:$0xff]  }
 0x21d   :  { %3281 = vmatprep.subr.bf16.mxu0 %v3687_v63  ;;  %3303 = vmatprep.subr.bf16.mxu1 %v3688_v0  ;;  %v3718_v62 = vld [vmem:[%s4876_s4 + $0x318] sm:$0xff]   ;;  %v3719_v63 = vld [vmem:[%s4876_s4 + $0x2e0] sm:$0xff]  }
 0x21e   :  { %v3720_v0 = vld [vmem:[%s4876_s4 + $0x360] sm:$0xff]  }
 0x220   :  { %3282 = vmatpush3.bf16.msra.mxu0 %v3689_v2  ;;  %3304 = vmatpush3.bf16.msra.mxu1 %v3690_v3  ;;  %v3721_v2 = vld [vmem:[%s4876_s4 + $0x2a0] sm:$0xff]  }
 0x221   :  { %3283 = vmatprep.subr.bf16.mxu0 %v3691_v4  ;;  %3305 = vmatprep.subr.bf16.mxu1 %v3692_v6  ;;  %v3722_v3 = vld [vmem:[%s4876_s4 + $0x320] sm:$0xff]   ;;  %v3723_v4 = vld [vmem:[%s4876_s4 + $0x2e8] sm:$0xff]  }
 0x222   :  { %v3724_v6 = vld [vmem:[%s4876_s4 + $0x368] sm:$0xff]  }
 0x224   :  { %3284 = vmatpush3.bf16.msra.mxu0 %v3693_v9  ;;  %3306 = vmatpush3.bf16.msra.mxu1 %v3694_v10  ;;  %v3726_v9 = vld [vmem:[%s4876_s4 + $0x328] sm:$0xff]   ;;  %v3727_v10 = vld [vmem:[%s4876_s4 + $0x2f0] sm:$0xff]  }
 0x225   :  { %3285 = vmatprep.subr.bf16.mxu0 %v3695_v14  ;;  %3307 = vmatprep.subr.bf16.mxu1 %v3696_v16  ;;  %v501_v14 = vrot.slane %v4517_v19, %v468_v17  ;;  %v3729_v16 = vld [vmem:[%s4876_s4 + $0x2b0] sm:$0xff]  }
 0x226   :  { %v1241_v13 = vpop.f32.mrb[8].mxu1  ;;  %v1364_v24 = vpop.f32.mrb[12].mxu0 }
 0x227   :  { %v1242_v25 = vadd.f32 %v1241_v13, %v481_v18  ;;  %v4641_v26 = vadd.f32 %v1364_v24, %v505_v53  ;;  %v1243_v28 = vpop.f32.mrb[9].mxu1  ;;  %v1366_v29 = vpop.f32.mrb[13].mxu0  ;;  %v3730_v18 = vld [vmem:[%s4876_s4 + $0x330] sm:$0xff]  }
 0x228   :  { %v1244_v30 = vadd.f32 %v1243_v28, %v485_v41  ;;  %v1367_v31 = vadd.f32 %v1366_v29, %v509_v20  ;;  %v1245_v27 = vpop.f32.mrb[10].mxu1  ;;  %v1368_v32 = vpop.f32.mrb[14].mxu0  ;;  %3286 = vmatpush3.bf16.msra.mxu0 %v3697_v21  ;;  %3308 = vmatpush3.bf16.msra.mxu1 %v3698_v22  ;;  %v3733_v21 = vld [vmem:[%s4876_s4 + $0x2b8] sm:$0xff]   ;;  %v3735_v29 = vld [vmem:[%s4877_s5] ss:$12 sps:$4 sm:$0xff]  }
 0x229   :  { %v1377_v35 = vmax.f32 %v1242_v25, 0.0  ;;  %v1246_v36 = vpop.f32.mrb[11].mxu1  ;;  %v1369_v37 = vpop.f32.mrb[15].mxu0  ;;  %3287 = vmatprep.subr.bf16.mxu0 %v3699_v43  ;;  %3309 = vmatprep.subr.bf16.mxu1 %v3700_v44  ;;  %v3734_v22 = vld [vmem:[%s4876_s4 + $0x338] sm:$0xff]   ;;  %v1383_v23 = vmax.f32 %v4641_v26, 0.0 }
 0x22a   :  { %v1378_v40 = vmax.f32 %v1244_v30, 0.0  ;;  %v1384_v42 = vmax.f32 %v1367_v31, 0.0  ;;  %v3784_v30 = vmov 0.0   ;;  %v3736_v26 = vld [vmem:[%s4877_s5 + $0x18] ss:$12 sps:$4 sm:$0xff]  }
 0x22b   :  { %v1391_v49 = vpack.c.bf16 %v1377_v35, %v1377_v35  ;;  %v1397_v25 = vpack.c.bf16 %v1383_v23, %v1383_v23  ;;  %v3737_v31 = vld [vmem:[%s4877_s5 + $0x30] ss:$12 sps:$4 sm:$0xff]   ;;  %v3738_v27 = vld [vmem:[%s4877_s5 + $0x48] ss:$12 sps:$4 sm:$0xff]   ;;  %v3739_v32 = vld [vmem:[%s4877_s5 + $0x60] ss:$12 sps:$4 sm:$0xff]  }
 0x22c   :  { %v1392_v45 = vpack.c.bf16 %v1378_v40, %v1378_v40  ;;  %3288 = vmatpush3.bf16.msra.mxu0 %v3701_v33  ;;  %3310 = vmatpush3.bf16.msra.mxu1 %v3702_v7  ;;  %v1398_v52 = vpack.c.bf16 %v1384_v42, %v1384_v42  ;;  %v3740_v33 = vld [vmem:[%s4877_s5 + $0x78] ss:$12 sps:$4 sm:$0xff]  }
 0x22d   :  { %3317 = vmatprep.subr.bf16.mxu0 %v3703_v38  ;;  %3339 = vmatprep.subr.bf16.mxu1 %v3704_v39  ;;  %v3070_v39 = vld [vmem:[%s4878_s6 + $0x7] ss:$0 sm:$0xff] }
 0x22e   :  { %2452 = vmatprep.mubr.bf16.mxu0 %v1392_v45  ;;  %v3743_v23 = vld [vmem:[%s4877_s5 + $0x4] ss:$12 sps:$4 sm:$0xff]  }
 0x22f   :  { %2453 = vmatmul.mubr.bf16.vlgmr.msra.gmra.mrb[20].mxu0 %v1391_v49  ;;  %2493 = vmatmul.mubr.bf16.vlgmr.msra.gmra.mrb[24].mxu1 %v1393_v48 }
 0x230   :  { %3318 = vmatpush3.bf16.msra.mxu0 %v3705_v46  ;;  %3340 = vmatpush3.bf16.msra.mxu1 %v3706_v47 }
 0x231   :  { %2572 = vmatprep.mubr.bf16.mxu1 %v1398_v52  ;;  %3319 = vmatprep.subr.bf16.mxu0 %v3707_v50 }
 0x232   :  { %3341 = vmatprep.subr.bf16.mxu1 %v3708_v51 }
 0x234   :  { %3320 = vmatpush3.bf16.msra.mxu0 %v3709_v54  ;;  %3342 = vmatpush3.bf16.msra.mxu1 %v3710_v55 }
 0x235   :  { %3321 = vmatprep.subr.bf16.mxu0 %v3711_v56  ;;  %3343 = vmatprep.subr.bf16.mxu1 %v3712_v57 }
 0x238   :  { %3322 = vmatpush3.bf16.msra.mxu0 %v3713_v58  ;;  %3344 = vmatpush3.bf16.msra.mxu1 %v3714_v59 }
 0x239   :  { %3323 = vmatprep.subr.bf16.mxu0 %v3715_v60  ;;  %3345 = vmatprep.subr.bf16.mxu1 %v3716_v61 }
 0x23c   :  { %3324 = vmatpush3.bf16.msra.mxu0 %v3717_v1  ;;  %3346 = vmatpush3.bf16.msra.mxu1 %v3718_v62 }
 0x23d   :  { %3325 = vmatprep.subr.bf16.mxu0 %v3719_v63  ;;  %3347 = vmatprep.subr.bf16.mxu1 %v3720_v0 }
 0x240   :  { %3326 = vmatpush3.bf16.msra.mxu0 %v3721_v2  ;;  %3348 = vmatpush3.bf16.msra.mxu1 %v3722_v3 }
 0x241   :  { %3327 = vmatprep.subr.bf16.mxu0 %v3723_v4  ;;  %3349 = vmatprep.subr.bf16.mxu1 %v3724_v6  ;;  %v3742_v6 = vld [vmem:[%s4877_s5 + $0xa8] ss:$12 sps:$4 sm:$0xff]  }
 0x244   :  { %3328 = vmatpush3.bf16.msra.mxu0 %v3725_v8  ;;  %3350 = vmatpush3.bf16.msra.mxu1 %v3726_v9 }
 0x245   :  { %3329 = vmatprep.subr.bf16.mxu0 %v3727_v10  ;;  %3351 = vmatprep.subr.bf16.mxu1 %v3728_v11 }
 0x246   :  { %v1323_v53 = vpop.f32.mrb[12].mxu1 }
 0x247   :  { %v1324_v17 = vadd.f32 %v1323_v53, %v497_v12  ;;  %v1325_v19 = vpop.f32.mrb[13].mxu1 }
 0x248   :  { %v1326_v41 = vadd.f32 %v1325_v19, %v501_v14  ;;  %v1327_v20 = vpop.f32.mrb[14].mxu1  ;;  %3330 = vmatpush3.bf16.msra.mxu0 %v3729_v16  ;;  %3352 = vmatpush3.bf16.msra.mxu1 %v3730_v18 }
 0x249   :  { %v1381_v43 = vmax.f32 %v1324_v17, 0.0  ;;  %v1328_v44 = vpop.f32.mrb[15].mxu1  ;;  %3331 = vmatprep.subr.bf16.mxu0 %v3731_v15  ;;  %3353 = vmatprep.subr.bf16.mxu1 %v3732_v5 }
 0x24a   :  { %v1382_v13 = vmax.f32 %v1326_v41, 0.0  ;;  %v3745_v44 = vld [vmem:[%s4877_s5 + $0x34] ss:$12 sps:$4 sm:$0xff]  }
 0x24b   :  { %v1395_v28 = vpack.c.bf16 %v1381_v43, %v1381_v43  ;;  %v3744_v43 = vld [vmem:[%s4877_s5 + $0x1c] ss:$12 sps:$4 sm:$0xff]  }
 0x24c   :  { %v1396_v24 = vpack.c.bf16 %v1382_v13, %v1382_v13  ;;  %3332 = vmatpush3.bf16.msra.mxu0 %v3733_v21  ;;  %3354 = vmatpush3.bf16.msra.mxu1 %v3734_v22  ;;  %v3746_v13 = vld [vmem:[%s4877_s5 + $0x4c] ss:$12 sps:$4 sm:$0xff]  }
 0x24d   :  { %3384 = vmatprep.subr.bf16.mxu0 %v3784_v30  ;;  %3404 = vmatprep.subr.bf16.mxu1 %v3784_v30 }
 0x24e   :  { %2532 = vmatprep.mubr.bf16.mxu0 %v1396_v24  ;;  %v3747_v24 = vld [vmem:[%s4877_s5 + $0x64] ss:$12 sps:$4 sm:$0xff]  }
 0x24f   :  { %2533 = vmatmul.mubr.bf16.vlgmr.msra.gmra.mrb[24].mxu0 %v1395_v28  ;;  %2573 = vmatmul.mubr.bf16.vlgmr.msra.gmra.mrb[28].mxu1 %v1397_v25  ;;  %v3748_v25 = vld [vmem:[%s4877_s5 + $0x7c] ss:$12 sps:$4 sm:$0xff]   ;;  %v3749_v28 = vld [vmem:[%s4877_s5 + $0x94] ss:$12 sps:$4 sm:$0xff]  }
 0x250   :  { %3385 = vmatpush3.bf16.msra.mxu0 %v3735_v29  ;;  %3400 = vmatprep.mubr.msk.bf16.mxu0 %vm3785_vm5, %v3784_v30  ;;  %v3750_v29 = vld [vmem:[%s4877_s5 + $0xac] ss:$12 sps:$4 sm:$0xff]  }
 0x251   :  { %3386 = vmatprep.subr.bf16.mxu0 %v3784_v30  ;;  %3420 = vmatprep.mubr.msk.bf16.mxu1 %vm3785_vm5, %v3784_v30 }
 0x252   :  { %3405 = vmatpush3.bf16.msra.mxu1 %v3743_v23 }
 0x253   :  { %3406 = vmatprep.subr.bf16.mxu1 %v3784_v30 }
 0x254   :  { %3387 = vmatpush3.bf16.msra.mxu0 %v3736_v26  ;;  %v3183_v26 = vld [vmem:[%s4878_s6 + $0x3] ss:$0 sm:$0xff] }
 0x255   :  { %3388 = vmatprep.subr.bf16.mxu0 %v3784_v30 }
 0x256   :  { %3407 = vmatpush3.bf16.msra.mxu1 %v3744_v43 }
 0x257   :  { %3408 = vmatprep.subr.bf16.mxu1 %v3784_v30 }
 0x258   :  { %3389 = vmatpush3.bf16.msra.mxu0 %v3737_v31 }
 0x259   :  { %3390 = vmatprep.subr.bf16.mxu0 %v3784_v30 }
 0x25a   :  { %3409 = vmatpush3.bf16.msra.mxu1 %v3745_v44 }
 0x25b   :  { %3410 = vmatprep.subr.bf16.mxu1 %v3784_v30 }
 0x25c   :  { %3391 = vmatpush3.bf16.msra.mxu0 %v3738_v27 }
 0x25d   :  { %3392 = vmatprep.subr.bf16.mxu0 %v3784_v30 }
 0x25e   :  { %3411 = vmatpush3.bf16.msra.mxu1 %v3746_v13 }
 0x25f   :  { %3412 = vmatprep.subr.bf16.mxu1 %v3784_v30 }
 0x260   :  { %3393 = vmatpush3.bf16.msra.mxu0 %v3739_v32 }
 0x261   :  { %3394 = vmatprep.subr.bf16.mxu0 %v3784_v30 }
 0x262   :  { %3413 = vmatpush3.bf16.msra.mxu1 %v3747_v24 }
 0x263   :  { %3414 = vmatprep.subr.bf16.mxu1 %v3784_v30 }
 0x264   :  { %3395 = vmatpush3.bf16.msra.mxu0 %v3740_v33 }
 0x265   :  { %3396 = vmatprep.subr.bf16.mxu0 %v3784_v30 }
 0x266   :  { %3415 = vmatpush3.bf16.msra.mxu1 %v3748_v25 }
 0x267   :  { %3416 = vmatprep.subr.bf16.mxu1 %v3784_v30 }
 0x268   :  { %3397 = vmatpush3.bf16.msra.mxu0 %v3741_v34 }
 0x269   :  { %3398 = vmatprep.subr.bf16.mxu0 %v3784_v30 }
 0x26a   :  { %3417 = vmatpush3.bf16.msra.mxu1 %v3749_v28 }
 0x26b   :  { %3418 = vmatprep.subr.bf16.mxu1 %v3784_v30 }
 0x26c   :  { %3399 = vmatpush3.bf16.msra.mxu0 %v3742_v6 }
 0x26d   :  { %3424 = vmatprep.subr.bf16.mxu0 %v3784_v30 }
 0x26e   :  { %3419 = vmatpush3.bf16.msra.mxu1 %v3750_v29 }
 0x2c2   :  { %v3223_v7 = vpop.f32.mrb[16].mxu1 }
 0x2c3   :  { %v3224_v35 = vpop.f32.mrb[17].mxu1 }
 0x2c4   :  { %v3225_v36 = vadd.f32 %v3224_v35, %v3223_v7  ;;  %v3226_v37 = vpop.f32.mrb[18].mxu1 }
 0x2c5   :  { %v3227_v38 = vpop.f32.mrb[19].mxu1 }
 0x2c6   :  { %v2335_v47 = vadd.f32 %v3225_v36, %v3070_v39 }
 0x2e2   :  { %v3245_v40 = vpop.f32.mrb[16].mxu0  ;;  %v3267_v42 = vpop.f32.mrb[20].mxu1 }
 0x2e3   :  { %v3246_v45 = vpop.f32.mrb[17].mxu0  ;;  %v3268_v46 = vpop.f32.mrb[21].mxu1 }
 0x2e4   :  { %v3247_v48 = vadd.f32 %v3246_v45, %v3245_v40  ;;  %v3269_v49 = vadd.f32 %v3268_v46, %v3267_v42  ;;  %v3248_v50 = vpop.f32.mrb[18].mxu0  ;;  %v3270_v51 = vpop.f32.mrb[22].mxu1  ;;  %v3751_v40 = vld [vmem:[%s4877_s5 + $0x8] ss:$12 sps:$4 sm:$0xff]   ;;  %v3752_v42 = vld [vmem:[%s4877_s5 + $0x20] ss:$12 sps:$4 sm:$0xff]  }
 0x2e5   :  { %v3249_v52 = vpop.f32.mrb[19].mxu0  ;;  %v3271_v54 = vpop.f32.mrb[23].mxu1  ;;  %v3753_v45 = vld [vmem:[%s4877_s5 + $0x38] ss:$12 sps:$4 sm:$0xff]   ;;  %v3754_v46 = vld [vmem:[%s4877_s5 + $0x50] ss:$12 sps:$4 sm:$0xff]  }
 0x2e6   :  { %v2375_v55 = vadd.f32 %v3247_v48, %v2335_v47  ;;  %v3192_v47 = vld [vmem:[%s4878_s6 + $0x5] ss:$0 sm:$0xff] }
 0x2e8   :  { %v2415_v56 = vadd.f32 %v3269_v49, %v2375_v55 }
 0x302   :  { %v3289_v57 = vpop.f32.mrb[20].mxu0  ;;  %v3311_v58 = vpop.f32.mrb[24].mxu1 }
 0x303   :  { %v3290_v59 = vpop.f32.mrb[21].mxu0  ;;  %v3312_v60 = vpop.f32.mrb[25].mxu1 }
 0x304   :  { %v3291_v61 = vadd.f32 %v3290_v59, %v3289_v57  ;;  %v3313_v1 = vadd.f32 %v3312_v60, %v3311_v58  ;;  %v3292_v62 = vpop.f32.mrb[22].mxu0  ;;  %v3314_v63 = vpop.f32.mrb[26].mxu1  ;;  %v3201_v57 = vld [vmem:[%s4878_s6 + $0x9] ss:$0 sm:$0xff]  ;;  %s3787_s6 = smov [#allocation2]  }
 0x305   :  { %v3293_v0 = vpop.f32.mrb[23].mxu0  ;;  %v3315_v2 = vpop.f32.mrb[27].mxu1 }
 0x306   :  { %v2455_v3 = vadd.f32 %v3291_v61, %v2415_v56 }
 0x308   :  { %v2495_v4 = vadd.f32 %v3313_v1, %v2455_v3 }
 0x322   :  { %v3333_v8 = vpop.f32.mrb[24].mxu0  ;;  %v3355_v9 = vpop.f32.mrb[28].mxu1 }
 0x323   :  { %v3334_v10 = vpop.f32.mrb[25].mxu0  ;;  %v3356_v11 = vpop.f32.mrb[29].mxu1 }
 0x324   :  { %v3335_v12 = vadd.f32 %v3334_v10, %v3333_v8  ;;  %v3357_v14 = vadd.f32 %v3356_v11, %v3355_v9  ;;  %v3336_v16 = vpop.f32.mrb[26].mxu0  ;;  %v3358_v18 = vpop.f32.mrb[30].mxu1 }
 0x325   :  { %v3337_v15 = vpop.f32.mrb[27].mxu0  ;;  %v3359_v5 = vpop.f32.mrb[31].mxu1 }
 0x326   :  { %v2535_v53 = vadd.f32 %v3335_v12, %v2495_v4 }
 0x328   :  { %v2575_v17 = vadd.f32 %v3357_v14, %v2535_v53 }
 0x32a   :  { %v2703_v19 = vrot.slane %v2575_v17, 4  ;;  %v2581_v41 = vrot.slane %v2575_v17, 2 }
 0x32c   :  { %2704 = vrot.lane.b32.xlu1 %v2703_v19, %s3786_s22  ;;  %2582 = vrot.lane.b32.xlu0 %v2581_v41, %s3786_s22 }
 0x39e   :  { %v2583_v20 = vpop.permute.xlu0 %2582  ;;  %v2705_v37 = vpop.permute.xlu1 %2704 }
 0x39f   :  { %v2586_v21 = vsel %vm2585_vm6, %v2575_v17, %v2583_v20 }
 0x3a0   :  { %v2587_v22 = vpack.c.bf16 %v2586_v21, %v2586_v21 }
 0x3a2   :  { %3401 = vmatmul.mubr.bf16.vlgmr.msra.gmra.mrb[28].mxu0 %v2587_v22 }
 0x3a3   :  { %3432 = vmatprep.mubr.msk.bf16.mxu0 %vm3785_vm5, %v3784_v30  ;;  %3425 = vmatpush3.bf16.msra.mxu0 %v3751_v40 }
 0x3a4   :  { %3426 = vmatprep.subr.bf16.mxu0 %v3784_v30 }
 0x3a7   :  { %3427 = vmatpush3.bf16.msra.mxu0 %v3752_v42 }
 0x3a8   :  { %3428 = vmatprep.subr.bf16.mxu0 %v3784_v30 }
 0x3ab   :  { %3429 = vmatpush3.bf16.msra.mxu0 %v3753_v45 }
 0x3ac   :  { %3430 = vmatprep.subr.bf16.mxu0 %v3784_v30 }
 0x3af   :  { %3431 = vmatpush3.bf16.msra.mxu0 %v3754_v46 }
 0x475   :  { %v2691_v31 = vpop.f32.mrb[28].mxu0 }
 0x476   :  { %v2692_v27 = vadd.f32 %v3183_v26, %v2691_v31  ;;  %v3402_v32 = vpop.f32.mrb[29].mxu0 }
 0x477   :  { %v2694_v33 = vpop.f32.mrb[30].mxu0 }
 0x478   :  { %v2697_v7 = vmax.f32 %v2692_v27, 0.0  ;;  %v3403_v34 = vpop.f32.mrb[31].mxu0 }
 0x47a   :  { %2699 = vrot.lane.b32.xlu0 %v2697_v7, %s3786_s22 }
 0x4ec   :  { %v2700_v35 = vpop.permute.xlu0 %2699 }
 0x4ed   :  { %v2702_v36 = vadd.f32 %v2700_v35, %v2697_v7 }
 0x4ef   :  { %v2707_v38 = vsel %vm2585_vm6, %v2702_v36, %v2705_v37 }
 0x4f0   :  { %v2708_v39 = vpack.c.bf16 %v2707_v38, %v2707_v38 }
 0x4f2   :  { %3421 = vmatmul.mubr.bf16.vlgmr.msra.gmra.mrb[32].mxu1 %v2708_v39 }
 0x5c5   :  { %v2812_v48 = vpop.f32.mrb[32].mxu1 }
 0x5c6   :  { %v2813_v49 = vadd.f32 %v3192_v47, %v2812_v48  ;;  %v3422_v50 = vpop.f32.mrb[33].mxu1 }
 0x5c7   :  { %v2815_v51 = vpop.f32.mrb[34].mxu1 }
 0x5c8   :  { %v2818_v52 = vmax.f32 %v2813_v49, 0.0  ;;  %v3423_v54 = vpop.f32.mrb[35].mxu1 }
 0x5ca   :  { %2820 = vrot.lane.b32.xlu1 %v2818_v52, %s3786_s22  ;;  %s2925_s22 = sshll.u32 %s3787_s6, 4  ;;  %s2926_s22 = int_to_ptr.vmem [resolvable:$true] %s2925_s22 }
 0x5cb   :  { %s3759_s25 = scalar_lea.vmem %s2926_s22, 32  ;;  %p3764_p1 = scmp.lt.s32.totalorder %s2926_s22, %s2926_s22 }
 0x5cc   :  { %p3760_p0 = scmp.ne.s32.totalorder %s2926_s22, %s3759_s25  ;;  %p3765_p2 = scmp.lt.s32.totalorder %s3759_s25, %s3759_s25 }
 0x5ce   :  { %p3766_p3 = por %p3765_p2, %p3764_p1 }
 0x5d0   :  { %p3767_p4 = pnand %p3766_p3, %p3760_p0 }
 0x63c   :  { %v2821_v55 = vpop.permute.xlu1 %2820 }
 0x63d   :  { %v2823_v56 = vadd.f32 %v2821_v55, %v2818_v52 }
 0x63f   :  { %v2824_v30 = vpack.c.bf16 %v2823_v56, %v2823_v56 }
 0x641   :  { %3433 = vmatmul.mubr.msk.bf16.vlgmr.msra.gmra.mrb[32].mxu0 %vm2585_vm6, %v2824_v30 }
 0x714   :  { %v2899_v58 = vpop.f32.mrb[32].mxu0 }
 0x715   :  { %v2900_v59 = vadd.f32 %v3201_v57, %v2899_v58  ;;  %v3434_v60 = vpop.f32.mrb[33].mxu0 }
 0x716   :  { %v2902_v61 = vpop.f32.mrb[34].mxu0 }
 0x717   :  { %v3435_v1 = vpop.f32.mrb[35].mxu0  ;;  %v2906_v62 = vsel %vm2905_vm7, %v2900_v59, -inf }
 0x718   :  { %2907 = vmax.xlane.f32.xlu0 %v2906_v62 }
 0x7a5   :  { %v2908_v63 = vpop.xlane.xlu0 %2907 }
 0x7a6   :  { %v2909_v0 = vsub.f32 %v2900_v59, %v2908_v63 }
 0x7a8   :  { %v2910_v2 = vmul.f32 1.442695, %v2909_v0 }
 0x7aa   :  { %3755 = vpow2.f32 %v2910_v2 }
 0x7b4   :  { %v3756_v3 = vpop.eup %3755 }
 0x7b5   :  { %v2912_v4 = vsel %vm2905_vm7, %v3756_v3, 0.0 }
 0x7b6   :  { %2913 = vadd.xlane.f32.xlu1 %v2912_v4 }
 0x843   :  { %v2914_v6 = vpop.xlane.xlu1 %2913 }
 0x844   :  { %3757 = vlog2.f32 %v2914_v6 }
 0x84e   :  { %v3758_v8 = vpop.eup %3757 }
 0x84f   :  { %v2916_v9 = vmul.f32 0.6931472, %v3758_v8 }
 0x851   :  { %v2917_v10 = vsub.f32 %v2909_v0, %v2916_v9 }
 0x853   :  { %2918 = vst.msk [vmem:[#allocation2] sm:$0x3] %vm2905_vm7, %v2917_v10 }
 0x854   :  { %3770 = shalt.err (!%p3767_p4)
}
 0x855   :  { %s3771_s3 = scalar_lea.hbm %s4879_s7, 32 }
 0x856   :  { %p3772_p5 = scmp.ne.s32.totalorder %s4879_s7, %s3771_s3  ;;  %p3775_p6 = scmp.lt.u32.totalorder %s3771_s3, %s4879_s7 }
 0x858   :  { %p3777_p7 = pnand %p3775_p6, %p3772_p5 }
 0x85a   :  { %3780 = shalt.err (!%p3777_p7)
}
 0x85b   :  { %2928 = dma.vmem_to_hbm [thread:$0]  %s2926_s22, 32, %s4879_s7, [#allocation3]  }
 0x85c   :  { %3781 = dma.done.wait [#allocation3], 32  }
 0x85d   :  { %3782 = vsyncadd [#allocation3], 4294967264 }
 0x85e   :  { %2932 = vsyncpa [#allocation3], 1 }

</bundles_post_ra>
